<compile_context>
chip_gen: v6e
topology: v6e:2x2x1
jax: 0.10.0
libtpu: 0.0.40
codegen_flags: <defaults>
</compile_context>

<pallas_src>
import math

import jax
import jax.numpy as jnp
from jax.experimental import pallas as pl
from jax.experimental.pallas import tpu as pltpu


def _matmul_add_relu_kernel(p_ref, w_ref, r_ref, o_ref):
    # p_ref : (TM, K)     im2col patches (lane-dense, K=3600)
    # w_ref : (K, Cout)   flattened conv weights
    # r_ref : (TM, Cout)  residual with bias pre-folded (x3 + b)
    # o_ref : (TM, Cout)
    acc = jnp.dot(p_ref[...], w_ref[...], preferred_element_type=jnp.float32)
    acc = acc + r_ref[...].astype(jnp.float32)
    o_ref[...] = jnp.maximum(acc, 0.0).astype(o_ref.dtype)


def conv2d_add_relu(x_nchw, w_oihw, bias, x3_nchw):
    """relu(conv2d(x1, w, b, stride=1, padding=0) + x3); NCHW in / NCHW out."""
    N, Cin, H, W = x_nchw.shape
    Cout, _, KH, KW = w_oihw.shape
    OH, OW = H - KH + 1, W - KW + 1
    M = N * OH * OW
    K = Cin * KH * KW

    # --- im2col in the wrapper.  Feature ordering of the patches is
    #     channel-major: index = cin*(KH*KW) + kh*KW + kw.  HIGHEST precision
    #     keeps the identity extraction exact in f32.
    patches = jax.lax.conv_general_dilated_patches(
        x_nchw, filter_shape=(KH, KW), window_strides=(1, 1),
        padding="VALID", precision=jax.lax.Precision.HIGHEST)
    # (N, Cin*KH*KW, OH, OW) -> (M, K)
    patches = jnp.transpose(patches, (0, 2, 3, 1)).reshape(M, K)

    # OIHW -> (Cin, KH, KW, Cout) -> (K, Cout): matches the patch ordering.
    w_flat = jnp.transpose(w_oihw, (1, 2, 3, 0)).reshape(K, Cout)

    # Residual with bias folded in: (N, Cout, OH, OW) -> (M, Cout).
    resid = jnp.transpose(x3_nchw, (0, 2, 3, 1)).reshape(M, Cout)
    resid = resid + bias.reshape(1, Cout)

    # --- tile the (batch*spatial) M dimension; K and Cout stay whole.
    tm = M if M <= 1024 else 512
    m_pad = (-M) % tm
    if m_pad:
        patches = jnp.pad(patches, ((0, m_pad), (0, 0)))
        resid = jnp.pad(resid, ((0, m_pad), (0, 0)))
    Mp = M + m_pad

    out_flat = pl.pallas_call(
        _matmul_add_relu_kernel,
        out_shape=jax.ShapeDtypeStruct((Mp, Cout), x_nchw.dtype),
        grid=(Mp // tm,),
        in_specs=[
            pl.BlockSpec((tm, K), lambda i: (i, 0)),
            pl.BlockSpec((K, Cout), lambda i: (0, 0)),
            pl.BlockSpec((tm, Cout), lambda i: (i, 0)),
        ],
        out_specs=pl.BlockSpec((tm, Cout), lambda i: (i, 0)),
        compiler_params=pltpu.CompilerParams(
            dimension_semantics=("parallel",)),
    )(patches, w_flat, resid)

    out = out_flat[:M].reshape(N, OH, OW, Cout)
    return jnp.transpose(out, (0, 3, 1, 2))  # back to NCHW
    # TODO(synk): if this op sits inside a larger NHWC pipeline, drop the
    # NCHW<->NHWC wrapper transposes and keep activations channel-last.


if __name__ == "__main__":
    # Model: Conv2d(16, 16, kernel_size=15, stride=1, padding=0)
    # Small shapes consistent with the module: H=W=18 -> conv output 4x4.
    N, Cin, Cout, Kk = 1, 16, 16, 15
    H = W = 18
    OH, OW = H - Kk + 1, W - Kk + 1

    key = jax.random.PRNGKey(0)
    k_w, k_b, k_x1, k_x3 = jax.random.split(key, 4)

    fan_in = Cin * Kk * Kk
    bound = 1.0 / math.sqrt(fan_in)
    conv_w = jax.random.uniform(k_w, (Cout, Cin, Kk, Kk), jnp.float32,
                                minval=-bound, maxval=bound)
    conv_b = jax.random.uniform(k_b, (Cout,), jnp.float32,
                                minval=-bound, maxval=bound)

    x1 = jax.random.normal(k_x1, (N, Cin, H, W), jnp.float32)
    x3 = jax.random.normal(k_x3, (N, Cout, OH, OW), jnp.float32)

    fn = jax.jit(conv2d_add_relu)
    out = fn(x1, conv_w, conv_b, x3)
    out = jax.block_until_ready(out)

    # Pure-JAX reference for sanity.
    ref = jax.lax.conv_general_dilated(
        x1, conv_w, window_strides=(1, 1), padding="VALID",
        dimension_numbers=("NCHW", "OIHW", "NCHW"),
        precision=jax.lax.Precision.HIGHEST)
    ref = jnp.maximum(ref + conv_b[None, :, None, None] + x3, 0.0)
    assert out.shape == (N, Cout, OH, OW)
    assert jnp.allclose(out, ref, atol=1e-4, rtol=1e-4)

    print("KERNEL_OK")
</pallas_src>

<mosaic_0001>
module attributes {stable_mosaic.version = 11 : i64} {
  func.func @_matmul_add_relu_kernel(%arg0: i32, %arg1: memref<16x3600xf32, #tpu.memory_space<vmem>>, %arg2: memref<3600x16xf32, #tpu.memory_space<vmem>>, %arg3: memref<16x16xf32, #tpu.memory_space<vmem>>, %arg4: memref<16x16xf32, #tpu.memory_space<vmem>>) attributes {dimension_semantics = [#tpu.dimension_semantics<parallel>], iteration_bounds = array<i64: 1>, scalar_prefetch = 0 : i64, scratch_operands = 0 : i64, tpu.core_type = #tpu.core_type<tc>, window_params = [{transform_indices = @transform_0, window_bounds = array<i64: 16, 3600>}, {pipeline_mode = #tpu.pipeline_mode<synchronous>, transform_indices = @transform_1, window_bounds = array<i64: 3600, 16>}, {transform_indices = @transform_2, window_bounds = array<i64: 16, 16>}, {transform_indices = @transform_3, window_bounds = array<i64: 16, 16>}]} {
    %c0 = arith.constant 0 : index
    %c0_0 = arith.constant 0 : index
    %0 = vector.load %arg1[%c0, %c0_0] : memref<16x3600xf32, #tpu.memory_space<vmem>>, vector<16x3600xf32>
    %c0_1 = arith.constant 0 : index
    %c0_2 = arith.constant 0 : index
    %1 = vector.load %arg2[%c0_1, %c0_2] : memref<3600x16xf32, #tpu.memory_space<vmem>>, vector<3600x16xf32>
    %cst = arith.constant dense<0.000000e+00> : vector<16x16xf32>
    %2 = tpu.matmul %0, %1, %cst {dimension_numbers = #tpu.dot_dimension_numbers<[1], [0], [0], [1], [0, 0, 1, 1], [], []>} : vector<16x3600xf32>, vector<3600x16xf32>, vector<16x16xf32> -> vector<16x16xf32>
    %c0_3 = arith.constant 0 : index
    %c0_4 = arith.constant 0 : index
    %3 = vector.load %arg3[%c0_3, %c0_4] : memref<16x16xf32, #tpu.memory_space<vmem>>, vector<16x16xf32>
    %4 = arith.addf %2, %3 : vector<16x16xf32>
    %cst_5 = arith.constant 0.000000e+00 : f32
    %5 = vector.broadcast %cst_5 : f32 to vector<16x16xf32>
    %6 = arith.maximumf %4, %5 : vector<16x16xf32>
    %c0_6 = arith.constant 0 : index
    %c0_7 = arith.constant 0 : index
    %7 = vector.load %arg4[%c0_6, %c0_7] : memref<16x16xf32, #tpu.memory_space<vmem>>, vector<16x16xf32>
    tpu.vector_store %arg4[%c0_6, %c0_7], %6 {strides = array<i32>} : memref<16x16xf32, #tpu.memory_space<vmem>>, vector<16x16xf32>,
    return
  }
  func.func @transform_0(%arg0: i32) -> (i32, i32) {
    %c0_i32 = arith.constant 0 : i32
    %c0_i32_0 = arith.constant 0 : i32
    return %arg0, %c0_i32 : i32, i32
  }
  func.func @transform_1(%arg0: i32) -> (i32, i32) {
    %c0_i32 = arith.constant 0 : i32
    %c0_i32_0 = arith.constant 0 : i32
    %c0_i32_1 = arith.constant 0 : i32
    return %c0_i32, %c0_i32_0 : i32, i32
  }
  func.func @transform_2(%arg0: i32) -> (i32, i32) {
    %c0_i32 = arith.constant 0 : i32
    %c0_i32_0 = arith.constant 0 : i32
    return %arg0, %c0_i32 : i32, i32
  }
  func.func @transform_3(%arg0: i32) -> (i32, i32) {
    %c0_i32 = arith.constant 0 : i32
    %c0_i32_0 = arith.constant 0 : i32
    return %arg0, %c0_i32 : i32, i32
  }
}

</mosaic_0001>

<bundles_post_ra>
// kernel: conv2d_add_relu.1
= control target key start
LH: loop header
LB: loop body
LE: loop exit
PB: predicated region body
PF: predicated region fallthrough
CT: control target
= control target key end

     0   :  { %s3807_s0 = inlined_call_operand.vmem [shape: f32[16,3600], index: 0, kind: input, shape index: {}]   ;;  %s3808_s1 = inlined_call_operand.vmem [shape: f32[3600,16], index: 1, kind: input, shape index: {}]   ;;  %s3809_s2 = inlined_call_operand.vmem [shape: f32[16,16], index: 2, kind: input, shape index: {}]   ;;  %s3810_s3 = inlined_call_operand.hbm [shape: f32[16,16], index: 3, kind: output, shape index: {}]  }
   0x1   :  { %v104_v0 = vld [vmem:[%s3808_s1 + $0xf8] sm:$0xff]  ;;  %v103_v4 = vld [vmem:[%s3808_s1 + $0xf0] sm:$0xff]  ;;  %v102_v8 = vld [vmem:[%s3808_s1 + $0xe8] sm:$0xff] }
   0x2   :  { %v136_v1 = vld [vmem:[%s3808_s1 + $0x1f8] sm:$0xff]  ;;  %1679 = vmatprep.subr.mxu0 %v104_v0  ;;  %v135_v5 = vld [vmem:[%s3808_s1 + $0x1f0] sm:$0xff]  ;;  %v134_v9 = vld [vmem:[%s3808_s1 + $0x1e8] sm:$0xff] }
   0x3   :  { %v88_v2 = vld [vmem:[%s3808_s1 + $0x78] sm:$0xff]  ;;  %1717 = vmatprep.subr.mxu1 %v136_v1  ;;  %v87_v6 = vld [vmem:[%s3808_s1 + $0x70] sm:$0xff]  ;;  %v86_v10 = vld [vmem:[%s3808_s1 + $0x68] sm:$0xff] }
   0x4   :  { %v120_v3 = vld [vmem:[%s3808_s1 + $0x178] sm:$0xff]  ;;  %1680 = vmatpush3.msra.mxu0 %v88_v2  ;;  %v119_v7 = vld [vmem:[%s3808_s1 + $0x170] sm:$0xff]  ;;  %v118_v11 = vld [vmem:[%s3808_s1 + $0x168] sm:$0xff] }
   0x5   :  { %1718 = vmatpush3.msra.mxu1 %v120_v3  ;;  %1681 = vmatprep.subr.mxu0 %v103_v4  ;;  %v101_v12 = vld [vmem:[%s3808_s1 + $0xe0] sm:$0xff]  ;;  %v100_v16 = vld [vmem:[%s3808_s1 + $0xd8] sm:$0xff]  ;;  %v99_v20 = vld [vmem:[%s3808_s1 + $0xd0] sm:$0xff] }
   0x6   :  { %1719 = vmatprep.subr.mxu1 %v135_v5  ;;  %1682 = vmatpush3.msra.mxu0 %v87_v6  ;;  %v133_v13 = vld [vmem:[%s3808_s1 + $0x1e0] sm:$0xff]  ;;  %v132_v17 = vld [vmem:[%s3808_s1 + $0x1d8] sm:$0xff]  ;;  %v131_v21 = vld [vmem:[%s3808_s1 + $0x1d0] sm:$0xff] }
   0x7   :  { %1720 = vmatpush3.msra.mxu1 %v119_v7  ;;  %1683 = vmatprep.subr.mxu0 %v102_v8  ;;  %v85_v14 = vld [vmem:[%s3808_s1 + $0x60] sm:$0xff]  ;;  %v84_v18 = vld [vmem:[%s3808_s1 + $0x58] sm:$0xff]  ;;  %v83_v22 = vld [vmem:[%s3808_s1 + $0x50] sm:$0xff] }
   0x8   :  { %1721 = vmatprep.subr.mxu1 %v134_v9  ;;  %v117_v15 = vld [vmem:[%s3808_s1 + $0x160] sm:$0xff]  ;;  %1684 = vmatpush3.msra.mxu0 %v86_v10  ;;  %v116_v19 = vld [vmem:[%s3808_s1 + $0x158] sm:$0xff]  ;;  %v115_v23 = vld [vmem:[%s3808_s1 + $0x150] sm:$0xff] }
   0x9   :  { %1722 = vmatpush3.msra.mxu1 %v118_v11  ;;  %1685 = vmatprep.subr.mxu0 %v101_v12  ;;  %v98_v24 = vld [vmem:[%s3808_s1 + $0xc8] sm:$0xff]  ;;  %v97_v28 = vld [vmem:[%s3808_s1 + $0xc0] sm:$0xff]  ;;  %v96_v32 = vld [vmem:[%s3808_s1 + $0xb8] sm:$0xff] }
   0xa   :  { %1723 = vmatprep.subr.mxu1 %v133_v13  ;;  %1686 = vmatpush3.msra.mxu0 %v85_v14  ;;  %v130_v25 = vld [vmem:[%s3808_s1 + $0x1c8] sm:$0xff]  ;;  %v129_v29 = vld [vmem:[%s3808_s1 + $0x1c0] sm:$0xff]  ;;  %v128_v33 = vld [vmem:[%s3808_s1 + $0x1b8] sm:$0xff] }
   0xb   :  { %1724 = vmatpush3.msra.mxu1 %v117_v15  ;;  %1687 = vmatprep.subr.mxu0 %v100_v16  ;;  %v82_v26 = vld [vmem:[%s3808_s1 + $0x48] sm:$0xff]  ;;  %v81_v30 = vld [vmem:[%s3808_s1 + $0x40] sm:$0xff]  ;;  %v80_v34 = vld [vmem:[%s3808_s1 + $0x38] sm:$0xff] }
   0xc   :  { %1725 = vmatprep.subr.mxu1 %v132_v17  ;;  %1688 = vmatpush3.msra.mxu0 %v84_v18  ;;  %v114_v27 = vld [vmem:[%s3808_s1 + $0x148] sm:$0xff]  ;;  %v113_v31 = vld [vmem:[%s3808_s1 + $0x140] sm:$0xff]  ;;  %v112_v35 = vld [vmem:[%s3808_s1 + $0x138] sm:$0xff] }
   0xd   :  { %1726 = vmatpush3.msra.mxu1 %v116_v19  ;;  %1689 = vmatprep.subr.mxu0 %v99_v20  ;;  %v95_v36 = vld [vmem:[%s3808_s1 + $0xb0] sm:$0xff]  ;;  %v94_v40 = vld [vmem:[%s3808_s1 + $0xa8] sm:$0xff]  ;;  %v93_v44 = vld [vmem:[%s3808_s1 + $0xa0] sm:$0xff] }
   0xe   :  { %1727 = vmatprep.subr.mxu1 %v131_v21  ;;  %1690 = vmatpush3.msra.mxu0 %v83_v22  ;;  %v127_v37 = vld [vmem:[%s3808_s1 + $0x1b0] sm:$0xff]  ;;  %v126_v41 = vld [vmem:[%s3808_s1 + $0x1a8] sm:$0xff]  ;;  %v125_v45 = vld [vmem:[%s3808_s1 + $0x1a0] sm:$0xff] }
   0xf   :  { %1728 = vmatpush3.msra.mxu1 %v115_v23  ;;  %1691 = vmatprep.subr.mxu0 %v98_v24  ;;  %v79_v38 = vld [vmem:[%s3808_s1 + $0x30] sm:$0xff]  ;;  %v78_v42 = vld [vmem:[%s3808_s1 + $0x28] sm:$0xff]  ;;  %v77_v46 = vld [vmem:[%s3808_s1 + $0x20] sm:$0xff] }
  0x10   :  { %1729 = vmatprep.subr.mxu1 %v130_v25  ;;  %1692 = vmatpush3.msra.mxu0 %v82_v26  ;;  %v111_v39 = vld [vmem:[%s3808_s1 + $0x130] sm:$0xff]  ;;  %v110_v43 = vld [vmem:[%s3808_s1 + $0x128] sm:$0xff]  ;;  %v109_v47 = vld [vmem:[%s3808_s1 + $0x120] sm:$0xff] }
  0x11   :  { %1730 = vmatpush3.msra.mxu1 %v114_v27  ;;  %1693 = vmatprep.subr.mxu0 %v97_v28  ;;  %v92_v48 = vld [vmem:[%s3808_s1 + $0x98] sm:$0xff]  ;;  %v91_v52 = vld [vmem:[%s3808_s1 + $0x90] sm:$0xff]  ;;  %v90_v56 = vld [vmem:[%s3808_s1 + $0x88] sm:$0xff] }
  0x12   :  { %1731 = vmatprep.subr.mxu1 %v129_v29  ;;  %1694 = vmatpush3.msra.mxu0 %v81_v30  ;;  %v124_v49 = vld [vmem:[%s3808_s1 + $0x198] sm:$0xff]  ;;  %v123_v53 = vld [vmem:[%s3808_s1 + $0x190] sm:$0xff]  ;;  %v122_v57 = vld [vmem:[%s3808_s1 + $0x188] sm:$0xff] }
  0x13   :  { %1732 = vmatpush3.msra.mxu1 %v113_v31  ;;  %1695 = vmatprep.subr.mxu0 %v96_v32  ;;  %v76_v50 = vld [vmem:[%s3808_s1 + $0x18] sm:$0xff]  ;;  %v75_v54 = vld [vmem:[%s3808_s1 + $0x10] sm:$0xff]  ;;  %v74_v58 = vld [vmem:[%s3808_s1 + $0x8] sm:$0xff] }
  0x14   :  { %1733 = vmatprep.subr.mxu1 %v128_v33  ;;  %1696 = vmatpush3.msra.mxu0 %v80_v34  ;;  %v108_v51 = vld [vmem:[%s3808_s1 + $0x118] sm:$0xff]  ;;  %v107_v55 = vld [vmem:[%s3808_s1 + $0x110] sm:$0xff]  ;;  %v106_v59 = vld [vmem:[%s3808_s1 + $0x108] sm:$0xff] }
  0x15   :  { %1734 = vmatpush3.msra.mxu1 %v112_v35  ;;  %1697 = vmatprep.subr.mxu0 %v95_v36  ;;  %v89_v60 = vld [vmem:[%s3808_s1 + $0x80] sm:$0xff]  ;;  %v16_v63 = vld [vmem:[%s3807_s0 + $0x8] sm:$0xff]  ;;  %v18_v2 = vld [vmem:[%s3807_s0 + $0x18] sm:$0xff] }
  0x16   :  { %1735 = vmatprep.subr.mxu1 %v127_v37  ;;  %1698 = vmatpush3.msra.mxu0 %v79_v38  ;;  %v121_v61 = vld [vmem:[%s3808_s1 + $0x180] sm:$0xff]  ;;  %v168_v3 = vld [vmem:[%s3808_s1 + $0x2f8] sm:$0xff]  ;;  %v17_v5 = vld [vmem:[%s3807_s0 + $0x10] sm:$0xff] }
  0x17   :  { %1736 = vmatpush3.msra.mxu1 %v111_v39  ;;  %1699 = vmatprep.subr.mxu0 %v94_v40  ;;  %v73_v62 = vld [vmem:[%s3808_s1] sm:$0xff]  ;;  %v200_v4 = vld [vmem:[%s3808_s1 + $0x3f8] sm:$0xff]  ;;  %v167_v8 = vld [vmem:[%s3808_s1 + $0x2f0] sm:$0xff] }
  0x18   :  { %1737 = vmatprep.subr.mxu1 %v126_v41  ;;  %1700 = vmatpush3.msra.mxu0 %v78_v42  ;;  %v105_v0 = vld [vmem:[%s3808_s1 + $0x100] sm:$0xff]  ;;  %v152_v6 = vld [vmem:[%s3808_s1 + $0x278] sm:$0xff]  ;;  %v199_v9 = vld [vmem:[%s3808_s1 + $0x3f0] sm:$0xff] }
  0x19   :  { %1738 = vmatpush3.msra.mxu1 %v110_v43  ;;  %1701 = vmatprep.subr.mxu0 %v93_v44  ;;  %v15_v1 = vld [vmem:[%s3807_s0] sm:$0xff]  ;;  %v184_v7 = vld [vmem:[%s3808_s1 + $0x378] sm:$0xff]  ;;  %v151_v10 = vld [vmem:[%s3808_s1 + $0x270] sm:$0xff] }
  0x1a   :  { %1739 = vmatprep.subr.mxu1 %v125_v45  ;;  %1702 = vmatpush3.msra.mxu0 %v77_v46  ;;  %v183_v11 = vld [vmem:[%s3808_s1 + $0x370] sm:$0xff]  ;;  %v166_v12 = vld [vmem:[%s3808_s1 + $0x2e8] sm:$0xff]  ;;  %v165_v16 = vld [vmem:[%s3808_s1 + $0x2e0] sm:$0xff] }
  0x1b   :  { %1740 = vmatpush3.msra.mxu1 %v109_v47  ;;  %1703 = vmatprep.subr.mxu0 %v92_v48  ;;  %v198_v13 = vld [vmem:[%s3808_s1 + $0x3e8] sm:$0xff]  ;;  %v197_v17 = vld [vmem:[%s3808_s1 + $0x3e0] sm:$0xff]  ;;  %v164_v20 = vld [vmem:[%s3808_s1 + $0x2d8] sm:$0xff] }
  0x1c   :  { %1741 = vmatprep.subr.mxu1 %v124_v49  ;;  %1704 = vmatpush3.msra.mxu0 %v76_v50  ;;  %v150_v14 = vld [vmem:[%s3808_s1 + $0x268] sm:$0xff]  ;;  %v149_v18 = vld [vmem:[%s3808_s1 + $0x260] sm:$0xff]  ;;  %v196_v21 = vld [vmem:[%s3808_s1 + $0x3d8] sm:$0xff] }
  0x1d   :  { %1742 = vmatpush3.msra.mxu1 %v108_v51  ;;  %1705 = vmatprep.subr.mxu0 %v91_v52  ;;  %v182_v15 = vld [vmem:[%s3808_s1 + $0x368] sm:$0xff]  ;;  %v181_v19 = vld [vmem:[%s3808_s1 + $0x360] sm:$0xff]  ;;  %v148_v22 = vld [vmem:[%s3808_s1 + $0x258] sm:$0xff] }
  0x1e   :  { %1743 = vmatprep.subr.mxu1 %v123_v53  ;;  %1706 = vmatpush3.msra.mxu0 %v75_v54  ;;  %v180_v23 = vld [vmem:[%s3808_s1 + $0x358] sm:$0xff]  ;;  %v163_v24 = vld [vmem:[%s3808_s1 + $0x2d0] sm:$0xff]  ;;  %v162_v28 = vld [vmem:[%s3808_s1 + $0x2c8] sm:$0xff] }
  0x1f   :  { %1744 = vmatpush3.msra.mxu1 %v107_v55  ;;  %1707 = vmatprep.subr.mxu0 %v90_v56  ;;  %v195_v25 = vld [vmem:[%s3808_s1 + $0x3d0] sm:$0xff]  ;;  %v194_v29 = vld [vmem:[%s3808_s1 + $0x3c8] sm:$0xff]  ;;  %v161_v32 = vld [vmem:[%s3808_s1 + $0x2c0] sm:$0xff] }
  0x20   :  { %1745 = vmatprep.subr.mxu1 %v122_v57  ;;  %1708 = vmatpush3.msra.mxu0 %v74_v58  ;;  %v147_v26 = vld [vmem:[%s3808_s1 + $0x250] sm:$0xff]  ;;  %v146_v30 = vld [vmem:[%s3808_s1 + $0x248] sm:$0xff]  ;;  %v193_v33 = vld [vmem:[%s3808_s1 + $0x3c0] sm:$0xff] }
  0x21   :  { %1746 = vmatpush3.msra.mxu1 %v106_v59  ;;  %1709 = vmatprep.subr.mxu0 %v89_v60  ;;  %v179_v27 = vld [vmem:[%s3808_s1 + $0x350] sm:$0xff]  ;;  %v178_v31 = vld [vmem:[%s3808_s1 + $0x348] sm:$0xff]  ;;  %v145_v34 = vld [vmem:[%s3808_s1 + $0x240] sm:$0xff] }
  0x22   :  { %1747 = vmatprep.subr.mxu1 %v121_v61  ;;  %1710 = vmatpush3.msra.mxu0 %v73_v62  ;;  %v177_v35 = vld [vmem:[%s3808_s1 + $0x340] sm:$0xff]  ;;  %v160_v36 = vld [vmem:[%s3808_s1 + $0x2b8] sm:$0xff]  ;;  %v159_v40 = vld [vmem:[%s3808_s1 + $0x2b0] sm:$0xff] }
  0x23   :  { %596 = vmatprep.mubr.f32.mxu0 %v16_v63  ;;  %1748 = vmatpush3.msra.mxu1 %v105_v0  ;;  %v192_v37 = vld [vmem:[%s3808_s1 + $0x3b8] sm:$0xff]  ;;  %v191_v41 = vld [vmem:[%s3808_s1 + $0x3b0] sm:$0xff]  ;;  %v158_v44 = vld [vmem:[%s3808_s1 + $0x2a8] sm:$0xff] }
  0x24   :  { %597 = vmatmul.mubr.f32.vlgmr.msra.gmra.mxu0 %v15_v1  ;;  %671 = vmatprep.mubr.f32.mxu1 %v18_v2  ;;  %v144_v38 = vld [vmem:[%s3808_s1 + $0x238] sm:$0xff]  ;;  %v143_v42 = vld [vmem:[%s3808_s1 + $0x230] sm:$0xff]  ;;  %v190_v45 = vld [vmem:[%s3808_s1 + $0x3a8] sm:$0xff] }
  0x25   :  { %1755 = vmatprep.subr.mxu0 %v168_v3  ;;  %1793 = vmatprep.subr.mxu1 %v200_v4  ;;  %v176_v39 = vld [vmem:[%s3808_s1 + $0x338] sm:$0xff]  ;;  %v175_v43 = vld [vmem:[%s3808_s1 + $0x330] sm:$0xff]  ;;  %v142_v46 = vld [vmem:[%s3808_s1 + $0x228] sm:$0xff] }
  0x26   :  { %672 = vmatmul.mubr.f32.vlgmr.msra.gmra.mxu1 %v17_v5  ;;  %1756 = vmatpush3.msra.mxu0 %v152_v6  ;;  %v174_v47 = vld [vmem:[%s3808_s1 + $0x328] sm:$0xff]  ;;  %v157_v48 = vld [vmem:[%s3808_s1 + $0x2a0] sm:$0xff]  ;;  %v156_v52 = vld [vmem:[%s3808_s1 + $0x298] sm:$0xff] }
  0x27   :  { %1794 = vmatpush3.msra.mxu1 %v184_v7  ;;  %1757 = vmatprep.subr.mxu0 %v167_v8  ;;  %v189_v49 = vld [vmem:[%s3808_s1 + $0x3a0] sm:$0xff]  ;;  %v188_v53 = vld [vmem:[%s3808_s1 + $0x398] sm:$0xff]  ;;  %v45_v56 = vld [vmem:[%s3807_s0 + $0xf0] sm:$0xff] }
  0x28   :  { %1795 = vmatprep.subr.mxu1 %v199_v9  ;;  %1758 = vmatpush3.msra.mxu0 %v151_v10  ;;  %v141_v50 = vld [vmem:[%s3808_s1 + $0x220] sm:$0xff]  ;;  %v140_v54 = vld [vmem:[%s3808_s1 + $0x218] sm:$0xff]  ;;  %v155_v57 = vld [vmem:[%s3808_s1 + $0x290] sm:$0xff] }
  0x29   :  { %1796 = vmatpush3.msra.mxu1 %v183_v11  ;;  %1759 = vmatprep.subr.mxu0 %v166_v12  ;;  %v173_v51 = vld [vmem:[%s3808_s1 + $0x320] sm:$0xff]  ;;  %v172_v55 = vld [vmem:[%s3808_s1 + $0x318] sm:$0xff]  ;;  %v187_v58 = vld [vmem:[%s3808_s1 + $0x390] sm:$0xff] }
  0x2a   :  { %1797 = vmatprep.subr.mxu1 %v198_v13  ;;  %1760 = vmatpush3.msra.mxu0 %v150_v14  ;;  %v44_v59 = vld [vmem:[%s3807_s0 + $0xe8] sm:$0xff]  ;;  %v139_v60 = vld [vmem:[%s3808_s1 + $0x210] sm:$0xff]  ;;  %v47_v62 = vld [vmem:[%s3807_s0 + $0x100] sm:$0xff] }
  0x2b   :  { %1798 = vmatpush3.msra.mxu1 %v182_v15  ;;  %1761 = vmatprep.subr.mxu0 %v165_v16  ;;  %v171_v61 = vld [vmem:[%s3808_s1 + $0x310] sm:$0xff]  ;;  %v154_v63 = vld [vmem:[%s3808_s1 + $0x288] sm:$0xff]  ;;  %v46_v1 = vld [vmem:[%s3807_s0 + $0xf8] sm:$0xff] }
  0x2c   :  { %1799 = vmatprep.subr.mxu1 %v197_v17  ;;  %1762 = vmatpush3.msra.mxu0 %v149_v18  ;;  %v186_v0 = vld [vmem:[%s3808_s1 + $0x388] sm:$0xff]  ;;  %v153_v4 = vld [vmem:[%s3808_s1 + $0x280] sm:$0xff]  ;;  %v22_v10 = vld [vmem:[%s3807_s0 + $0x38] sm:$0xff] }
  0x2d   :  { %1800 = vmatpush3.msra.mxu1 %v181_v19  ;;  %1763 = vmatprep.subr.mxu0 %v164_v20  ;;  %v138_v2 = vld [vmem:[%s3808_s1 + $0x208] sm:$0xff]  ;;  %v185_v5 = vld [vmem:[%s3808_s1 + $0x380] sm:$0xff]  ;;  %v232_v11 = vld [vmem:[%s3808_s1 + $0x4f8] sm:$0xff] }
  0x2e   :  { %1801 = vmatprep.subr.mxu1 %v196_v21  ;;  %1764 = vmatpush3.msra.mxu0 %v148_v22  ;;  %v170_v3 = vld [vmem:[%s3808_s1 + $0x308] sm:$0xff]  ;;  %v137_v6 = vld [vmem:[%s3808_s1 + $0x200] sm:$0xff]  ;;  %v264_v12 = vld [vmem:[%s3808_s1 + $0x5f8] sm:$0xff] }
  0x2f   :  { %1802 = vmatpush3.msra.mxu1 %v180_v23  ;;  %1765 = vmatprep.subr.mxu0 %v163_v24  ;;  %v20_v7 = vld [vmem:[%s3807_s0 + $0x28] sm:$0xff]  ;;  %v169_v8 = vld [vmem:[%s3808_s1 + $0x300] sm:$0xff]  ;;  %v21_v13 = vld [vmem:[%s3807_s0 + $0x30] sm:$0xff] }
  0x30   :  { %1803 = vmatprep.subr.mxu1 %v195_v25  ;;  %1766 = vmatpush3.msra.mxu0 %v147_v26  ;;  %v19_v9 = vld [vmem:[%s3807_s0 + $0x20] sm:$0xff]  ;;  %v216_v14 = vld [vmem:[%s3808_s1 + $0x478] sm:$0xff]  ;;  %v231_v16 = vld [vmem:[%s3808_s1 + $0x4f0] sm:$0xff] }
  0x31   :  { %1804 = vmatpush3.msra.mxu1 %v179_v27  ;;  %1767 = vmatprep.subr.mxu0 %v162_v28  ;;  %v248_v15 = vld [vmem:[%s3808_s1 + $0x578] sm:$0xff]  ;;  %v263_v17 = vld [vmem:[%s3808_s1 + $0x5f0] sm:$0xff]  ;;  %v48_v21 = vld [vmem:[%s3807_s0 + $0x108] sm:$0xff] }
  0x32   :  { %1805 = vmatprep.subr.mxu1 %v194_v29  ;;  %1768 = vmatpush3.msra.mxu0 %v146_v30  ;;  %v49_v18 = vld [vmem:[%s3807_s0 + $0x110] sm:$0xff]  ;;  %v230_v22 = vld [vmem:[%s3808_s1 + $0x4e8] sm:$0xff]  ;;  %v51_v24 = vld [vmem:[%s3807_s0 + $0x120] sm:$0xff] }
  0x33   :  { %1806 = vmatpush3.msra.mxu1 %v178_v31  ;;  %1769 = vmatprep.subr.mxu0 %v161_v32  ;;  %v215_v19 = vld [vmem:[%s3808_s1 + $0x470] sm:$0xff]  ;;  %v262_v23 = vld [vmem:[%s3808_s1 + $0x5e8] sm:$0xff]  ;;  %v229_v27 = vld [vmem:[%s3808_s1 + $0x4e0] sm:$0xff] }
  0x34   :  { %1807 = vmatprep.subr.mxu1 %v193_v33  ;;  %1770 = vmatpush3.msra.mxu0 %v145_v34  ;;  %v247_v20 = vld [vmem:[%s3808_s1 + $0x570] sm:$0xff]  ;;  %v214_v25 = vld [vmem:[%s3808_s1 + $0x468] sm:$0xff]  ;;  %v50_v28 = vld [vmem:[%s3807_s0 + $0x118] sm:$0xff] }
  0x35   :  { %1808 = vmatpush3.msra.mxu1 %v177_v35  ;;  %1771 = vmatprep.subr.mxu0 %v160_v36  ;;  %v246_v26 = vld [vmem:[%s3808_s1 + $0x568] sm:$0xff]  ;;  %v261_v29 = vld [vmem:[%s3808_s1 + $0x5e0] sm:$0xff]  ;;  %v228_v32 = vld [vmem:[%s3808_s1 + $0x4d8] sm:$0xff] }
  0x36   :  { %1809 = vmatprep.subr.mxu1 %v192_v37  ;;  %1772 = vmatpush3.msra.mxu0 %v144_v38  ;;  %v213_v30 = vld [vmem:[%s3808_s1 + $0x460] sm:$0xff]  ;;  %v260_v33 = vld [vmem:[%s3808_s1 + $0x5d8] sm:$0xff]  ;;  %v227_v36 = vld [vmem:[%s3808_s1 + $0x4d0] sm:$0xff] }
  0x37   :  { %1810 = vmatpush3.msra.mxu1 %v176_v39  ;;  %1773 = vmatprep.subr.mxu0 %v159_v40  ;;  %v245_v31 = vld [vmem:[%s3808_s1 + $0x560] sm:$0xff]  ;;  %v212_v34 = vld [vmem:[%s3808_s1 + $0x458] sm:$0xff]  ;;  %v259_v37 = vld [vmem:[%s3808_s1 + $0x5d0] sm:$0xff] }
  0x38   :  { %1811 = vmatprep.subr.mxu1 %v191_v41  ;;  %1774 = vmatpush3.msra.mxu0 %v143_v42  ;;  %v244_v35 = vld [vmem:[%s3808_s1 + $0x558] sm:$0xff]  ;;  %v211_v38 = vld [vmem:[%s3808_s1 + $0x450] sm:$0xff]  ;;  %v226_v40 = vld [vmem:[%s3808_s1 + $0x4c8] sm:$0xff] }
  0x39   :  { %1812 = vmatpush3.msra.mxu1 %v175_v43  ;;  %1775 = vmatprep.subr.mxu0 %v158_v44  ;;  %v243_v39 = vld [vmem:[%s3808_s1 + $0x550] sm:$0xff]  ;;  %v258_v41 = vld [vmem:[%s3808_s1 + $0x5c8] sm:$0xff]  ;;  %v225_v44 = vld [vmem:[%s3808_s1 + $0x4c0] sm:$0xff] }
  0x3a   :  { %1813 = vmatprep.subr.mxu1 %v190_v45  ;;  %1776 = vmatpush3.msra.mxu0 %v142_v46  ;;  %v210_v42 = vld [vmem:[%s3808_s1 + $0x448] sm:$0xff]  ;;  %v257_v45 = vld [vmem:[%s3808_s1 + $0x5c0] sm:$0xff] }
  0x3b   :  { %1814 = vmatpush3.msra.mxu1 %v174_v47  ;;  %1777 = vmatprep.subr.mxu0 %v157_v48  ;;  %v242_v43 = vld [vmem:[%s3808_s1 + $0x548] sm:$0xff]  ;;  %v209_v46 = vld [vmem:[%s3808_s1 + $0x440] sm:$0xff]  ;;  %v224_v48 = vld [vmem:[%s3808_s1 + $0x4b8] sm:$0xff] }
  0x3c   :  { %1815 = vmatprep.subr.mxu1 %v189_v49  ;;  %1778 = vmatpush3.msra.mxu0 %v141_v50  ;;  %v241_v47 = vld [vmem:[%s3808_s1 + $0x540] sm:$0xff]  ;;  %v256_v49 = vld [vmem:[%s3808_s1 + $0x5b8] sm:$0xff] }
  0x3d   :  { %1816 = vmatpush3.msra.mxu1 %v173_v51  ;;  %1779 = vmatprep.subr.mxu0 %v156_v52  ;;  %v208_v50 = vld [vmem:[%s3808_s1 + $0x438] sm:$0xff]  ;;  %v223_v52 = vld [vmem:[%s3808_s1 + $0x4b0] sm:$0xff] }
  0x3e   :  { %1817 = vmatprep.subr.mxu1 %v188_v53  ;;  %1780 = vmatpush3.msra.mxu0 %v140_v54  ;;  %v240_v51 = vld [vmem:[%s3808_s1 + $0x538] sm:$0xff]  ;;  %v255_v53 = vld [vmem:[%s3808_s1 + $0x5b0] sm:$0xff] }
  0x3f   :  { %1818 = vmatpush3.msra.mxu1 %v172_v55  ;;  %601 = vmatprep.mubr.f32.mxu0 %v45_v56  ;;  %v207_v54 = vld [vmem:[%s3808_s1 + $0x430] sm:$0xff]  ;;  %v222_v56 = vld [vmem:[%s3808_s1 + $0x4a8] sm:$0xff] }
  0x40   :  { %1781 = vmatprep.subr.mxu0 %v155_v57  ;;  %1819 = vmatprep.subr.mxu1 %v187_v58  ;;  %v239_v55 = vld [vmem:[%s3808_s1 + $0x530] sm:$0xff]  ;;  %v254_v57 = vld [vmem:[%s3808_s1 + $0x5a8] sm:$0xff] }
  0x41   :  { %602 = vmatmul.mubr.f32.gmra.mxu0 %v44_v59  ;;  %1820 = vmatpush3.msra.mxu1 %v171_v61  ;;  %v206_v58 = vld [vmem:[%s3808_s1 + $0x428] sm:$0xff]  ;;  %v253_v61 = vld [vmem:[%s3808_s1 + $0x5a0] sm:$0xff] }
  0x42   :  { %1782 = vmatpush3.msra.mxu0 %v139_v60  ;;  %676 = vmatprep.mubr.f32.mxu1 %v47_v62  ;;  %v238_v59 = vld [vmem:[%s3808_s1 + $0x528] sm:$0xff]  ;;  %v221_v60 = vld [vmem:[%s3808_s1 + $0x4a0] sm:$0xff] }
  0x43   :  { %1783 = vmatprep.subr.mxu0 %v154_v63  ;;  %1821 = vmatprep.subr.mxu1 %v186_v0  ;;  %v205_v62 = vld [vmem:[%s3808_s1 + $0x420] sm:$0xff]  ;;  %v220_v0 = vld [vmem:[%s3808_s1 + $0x498] sm:$0xff] }
  0x44   :  { %677 = vmatmul.mubr.f32.gmra.mxu1 %v46_v1  ;;  %1784 = vmatpush3.msra.mxu0 %v138_v2  ;;  %v237_v63 = vld [vmem:[%s3808_s1 + $0x520] sm:$0xff]  ;;  %v252_v1 = vld [vmem:[%s3808_s1 + $0x598] sm:$0xff] }
  0x45   :  { %1822 = vmatpush3.msra.mxu1 %v170_v3  ;;  %1785 = vmatprep.subr.mxu0 %v153_v4  ;;  %v204_v2 = vld [vmem:[%s3808_s1 + $0x418] sm:$0xff]  ;;  %v219_v4 = vld [vmem:[%s3808_s1 + $0x490] sm:$0xff] }
  0x46   :  { %1823 = vmatprep.subr.mxu1 %v185_v5  ;;  %1786 = vmatpush3.msra.mxu0 %v137_v6  ;;  %v236_v3 = vld [vmem:[%s3808_s1 + $0x518] sm:$0xff]  ;;  %v251_v5 = vld [vmem:[%s3808_s1 + $0x590] sm:$0xff] }
  0x47   :  { %746 = vmatprep.mubr.f32.mxu0 %v20_v7  ;;  %1824 = vmatpush3.msra.mxu1 %v169_v8  ;;  %v203_v6 = vld [vmem:[%s3808_s1 + $0x410] sm:$0xff]  ;;  %v218_v8 = vld [vmem:[%s3808_s1 + $0x488] sm:$0xff] }
  0x48   :  { %747 = vmatmul.mubr.f32.vlgmr.msra.gmra.mxu0 %v19_v9  ;;  %821 = vmatprep.mubr.f32.mxu1 %v22_v10  ;;  %v235_v7 = vld [vmem:[%s3808_s1 + $0x510] sm:$0xff]  ;;  %v250_v9 = vld [vmem:[%s3808_s1 + $0x588] sm:$0xff] }
  0x49   :  { %1831 = vmatprep.subr.mxu0 %v232_v11  ;;  %1869 = vmatprep.subr.mxu1 %v264_v12  ;;  %v202_v10 = vld [vmem:[%s3808_s1 + $0x408] sm:$0xff]  ;;  %v217_v12 = vld [vmem:[%s3808_s1 + $0x480] sm:$0xff] }
  0x4a   :  { %822 = vmatmul.mubr.f32.vlgmr.msra.gmra.mxu1 %v21_v13  ;;  %1832 = vmatpush3.msra.mxu0 %v216_v14  ;;  %v234_v11 = vld [vmem:[%s3808_s1 + $0x508] sm:$0xff]  ;;  %v249_v13 = vld [vmem:[%s3808_s1 + $0x580] sm:$0xff] }
  0x4b   :  { %1870 = vmatpush3.msra.mxu1 %v248_v15  ;;  %1833 = vmatprep.subr.mxu0 %v231_v16  ;;  %v201_v14 = vld [vmem:[%s3808_s1 + $0x400] sm:$0xff]  ;;  %v24_v15 = vld [vmem:[%s3807_s0 + $0x48] sm:$0xff] }
  0x4c   :  { %1871 = vmatprep.subr.mxu1 %v263_v17  ;;  %751 = vmatprep.mubr.f32.mxu0 %v49_v18  ;;  %v233_v16 = vld [vmem:[%s3808_s1 + $0x500] sm:$0xff]  ;;  %v26_v18 = vld [vmem:[%s3807_s0 + $0x58] sm:$0xff] }
  0x4d   :  { %1834 = vmatpush3.msra.mxu0 %v215_v19  ;;  %1872 = vmatpush3.msra.mxu1 %v247_v20  ;;  %v23_v17 = vld [vmem:[%s3807_s0 + $0x40] sm:$0xff]  ;;  %v296_v19 = vld [vmem:[%s3808_s1 + $0x6f8] sm:$0xff] }
  0x4e   :  { %752 = vmatmul.mubr.f32.gmra.mxu0 %v48_v21  ;;  %1835 = vmatprep.subr.mxu0 %v230_v22  ;;  %v328_v20 = vld [vmem:[%s3808_s1 + $0x7f8] sm:$0xff]  ;;  %v25_v21 = vld [vmem:[%s3807_s0 + $0x50] sm:$0xff] }
  0x4f   :  { %1873 = vmatprep.subr.mxu1 %v262_v23  ;;  %826 = vmatprep.mubr.f32.mxu1 %v51_v24  ;;  %v280_v22 = vld [vmem:[%s3808_s1 + $0x678] sm:$0xff]  ;;  %v295_v24 = vld [vmem:[%s3808_s1 + $0x6f0] sm:$0xff] }
  0x50   :  { %1836 = vmatpush3.msra.mxu0 %v214_v25  ;;  %1874 = vmatpush3.msra.mxu1 %v246_v26  ;;  %v312_v23 = vld [vmem:[%s3808_s1 + $0x778] sm:$0xff]  ;;  %v327_v25 = vld [vmem:[%s3808_s1 + $0x7f0] sm:$0xff] }
  0x51   :  { %1837 = vmatprep.subr.mxu0 %v229_v27  ;;  %827 = vmatmul.mubr.f32.gmra.mxu1 %v50_v28  ;;  %v53_v26 = vld [vmem:[%s3807_s0 + $0x130] sm:$0xff] }
  0x52   :  { %1875 = vmatprep.subr.mxu1 %v261_v29  ;;  %1838 = vmatpush3.msra.mxu0 %v213_v30  ;;  %v279_v27 = vld [vmem:[%s3808_s1 + $0x670] sm:$0xff]  ;;  %v52_v29 = vld [vmem:[%s3807_s0 + $0x128] sm:$0xff] }
  0x53   :  { %1876 = vmatpush3.msra.mxu1 %v245_v31  ;;  %1839 = vmatprep.subr.mxu0 %v228_v32  ;;  %v311_v28 = vld [vmem:[%s3808_s1 + $0x770] sm:$0xff]  ;;  %v294_v30 = vld [vmem:[%s3808_s1 + $0x6e8] sm:$0xff]  ;;  %v55_v32 = vld [vmem:[%s3807_s0 + $0x140] sm:$0xff] }
  0x54   :  { %1877 = vmatprep.subr.mxu1 %v260_v33  ;;  %1840 = vmatpush3.msra.mxu0 %v212_v34  ;;  %v326_v31 = vld [vmem:[%s3808_s1 + $0x7e8] sm:$0xff] }
  0x55   :  { %1878 = vmatpush3.msra.mxu1 %v244_v35  ;;  %1841 = vmatprep.subr.mxu0 %v227_v36  ;;  %v278_v33 = vld [vmem:[%s3808_s1 + $0x668] sm:$0xff]  ;;  %v293_v35 = vld [vmem:[%s3808_s1 + $0x6e0] sm:$0xff]  ;;  %v54_v36 = vld [vmem:[%s3807_s0 + $0x138] sm:$0xff] }
  0x56   :  { %1879 = vmatprep.subr.mxu1 %v259_v37  ;;  %1842 = vmatpush3.msra.mxu0 %v211_v38  ;;  %v310_v34 = vld [vmem:[%s3808_s1 + $0x768] sm:$0xff]  ;;  %v325_v37 = vld [vmem:[%s3808_s1 + $0x7e0] sm:$0xff] }
  0x57   :  { %1880 = vmatpush3.msra.mxu1 %v243_v39  ;;  %1843 = vmatprep.subr.mxu0 %v226_v40  ;;  %v277_v38 = vld [vmem:[%s3808_s1 + $0x660] sm:$0xff]  ;;  %v292_v40 = vld [vmem:[%s3808_s1 + $0x6d8] sm:$0xff] }
  0x58   :  { %1881 = vmatprep.subr.mxu1 %v258_v41  ;;  %1844 = vmatpush3.msra.mxu0 %v210_v42  ;;  %v309_v39 = vld [vmem:[%s3808_s1 + $0x760] sm:$0xff]  ;;  %v324_v41 = vld [vmem:[%s3808_s1 + $0x7d8] sm:$0xff] }
  0x59   :  { %1882 = vmatpush3.msra.mxu1 %v242_v43  ;;  %1845 = vmatprep.subr.mxu0 %v225_v44  ;;  %v276_v42 = vld [vmem:[%s3808_s1 + $0x658] sm:$0xff]  ;;  %v291_v44 = vld [vmem:[%s3808_s1 + $0x6d0] sm:$0xff] }
  0x5a   :  { %1883 = vmatprep.subr.mxu1 %v257_v45  ;;  %1846 = vmatpush3.msra.mxu0 %v209_v46  ;;  %v308_v43 = vld [vmem:[%s3808_s1 + $0x758] sm:$0xff]  ;;  %v323_v45 = vld [vmem:[%s3808_s1 + $0x7d0] sm:$0xff] }
  0x5b   :  { %1884 = vmatpush3.msra.mxu1 %v241_v47  ;;  %1847 = vmatprep.subr.mxu0 %v224_v48  ;;  %v275_v46 = vld [vmem:[%s3808_s1 + $0x650] sm:$0xff]  ;;  %v290_v48 = vld [vmem:[%s3808_s1 + $0x6c8] sm:$0xff] }
  0x5c   :  { %1885 = vmatprep.subr.mxu1 %v256_v49  ;;  %1848 = vmatpush3.msra.mxu0 %v208_v50  ;;  %v307_v47 = vld [vmem:[%s3808_s1 + $0x750] sm:$0xff]  ;;  %v322_v49 = vld [vmem:[%s3808_s1 + $0x7c8] sm:$0xff] }
  0x5d   :  { %1886 = vmatpush3.msra.mxu1 %v240_v51  ;;  %1849 = vmatprep.subr.mxu0 %v223_v52  ;;  %v274_v50 = vld [vmem:[%s3808_s1 + $0x648] sm:$0xff]  ;;  %v289_v52 = vld [vmem:[%s3808_s1 + $0x6c0] sm:$0xff] }
  0x5e   :  { %1887 = vmatprep.subr.mxu1 %v255_v53  ;;  %1850 = vmatpush3.msra.mxu0 %v207_v54  ;;  %v306_v51 = vld [vmem:[%s3808_s1 + $0x748] sm:$0xff]  ;;  %v321_v53 = vld [vmem:[%s3808_s1 + $0x7c0] sm:$0xff] }
  0x5f   :  { %1888 = vmatpush3.msra.mxu1 %v239_v55  ;;  %1851 = vmatprep.subr.mxu0 %v222_v56  ;;  %v273_v54 = vld [vmem:[%s3808_s1 + $0x640] sm:$0xff]  ;;  %v288_v56 = vld [vmem:[%s3808_s1 + $0x6b8] sm:$0xff] }
  0x60   :  { %1889 = vmatprep.subr.mxu1 %v254_v57  ;;  %1852 = vmatpush3.msra.mxu0 %v206_v58  ;;  %v305_v55 = vld [vmem:[%s3808_s1 + $0x740] sm:$0xff]  ;;  %v320_v57 = vld [vmem:[%s3808_s1 + $0x7b8] sm:$0xff] }
  0x61   :  { %1890 = vmatpush3.msra.mxu1 %v238_v59  ;;  %1853 = vmatprep.subr.mxu0 %v221_v60  ;;  %v272_v58 = vld [vmem:[%s3808_s1 + $0x638] sm:$0xff]  ;;  %v287_v60 = vld [vmem:[%s3808_s1 + $0x6b0] sm:$0xff] }
  0x62   :  { %1891 = vmatprep.subr.mxu1 %v253_v61  ;;  %1854 = vmatpush3.msra.mxu0 %v205_v62  ;;  %v304_v59 = vld [vmem:[%s3808_s1 + $0x738] sm:$0xff]  ;;  %v319_v61 = vld [vmem:[%s3808_s1 + $0x7b0] sm:$0xff] }
  0x63   :  { %1892 = vmatpush3.msra.mxu1 %v237_v63  ;;  %1855 = vmatprep.subr.mxu0 %v220_v0  ;;  %v271_v62 = vld [vmem:[%s3808_s1 + $0x630] sm:$0xff]  ;;  %v286_v0 = vld [vmem:[%s3808_s1 + $0x6a8] sm:$0xff] }
  0x64   :  { %1893 = vmatprep.subr.mxu1 %v252_v1  ;;  %1856 = vmatpush3.msra.mxu0 %v204_v2  ;;  %v303_v63 = vld [vmem:[%s3808_s1 + $0x730] sm:$0xff]  ;;  %v318_v1 = vld [vmem:[%s3808_s1 + $0x7a8] sm:$0xff] }
  0x65   :  { %1894 = vmatpush3.msra.mxu1 %v236_v3  ;;  %1857 = vmatprep.subr.mxu0 %v219_v4  ;;  %v270_v2 = vld [vmem:[%s3808_s1 + $0x628] sm:$0xff]  ;;  %v285_v4 = vld [vmem:[%s3808_s1 + $0x6a0] sm:$0xff] }
  0x66   :  { %1895 = vmatprep.subr.mxu1 %v251_v5  ;;  %1858 = vmatpush3.msra.mxu0 %v203_v6  ;;  %v302_v3 = vld [vmem:[%s3808_s1 + $0x728] sm:$0xff]  ;;  %v317_v5 = vld [vmem:[%s3808_s1 + $0x7a0] sm:$0xff] }
  0x67   :  { %1896 = vmatpush3.msra.mxu1 %v235_v7  ;;  %1859 = vmatprep.subr.mxu0 %v218_v8  ;;  %v269_v6 = vld [vmem:[%s3808_s1 + $0x620] sm:$0xff]  ;;  %v284_v8 = vld [vmem:[%s3808_s1 + $0x698] sm:$0xff] }
  0x68   :  { %1897 = vmatprep.subr.mxu1 %v250_v9  ;;  %1860 = vmatpush3.msra.mxu0 %v202_v10  ;;  %v301_v7 = vld [vmem:[%s3808_s1 + $0x720] sm:$0xff]  ;;  %v316_v9 = vld [vmem:[%s3808_s1 + $0x798] sm:$0xff] }
  0x69   :  { %1898 = vmatpush3.msra.mxu1 %v234_v11  ;;  %1861 = vmatprep.subr.mxu0 %v217_v12  ;;  %v268_v10 = vld [vmem:[%s3808_s1 + $0x618] sm:$0xff]  ;;  %v283_v12 = vld [vmem:[%s3808_s1 + $0x690] sm:$0xff] }
  0x6a   :  { %1899 = vmatprep.subr.mxu1 %v249_v13  ;;  %1862 = vmatpush3.msra.mxu0 %v201_v14  ;;  %v300_v11 = vld [vmem:[%s3808_s1 + $0x718] sm:$0xff]  ;;  %v315_v13 = vld [vmem:[%s3808_s1 + $0x790] sm:$0xff] }
  0x6b   :  { %896 = vmatprep.mubr.f32.mxu0 %v24_v15  ;;  %1900 = vmatpush3.msra.mxu1 %v233_v16  ;;  %v267_v14 = vld [vmem:[%s3808_s1 + $0x610] sm:$0xff]  ;;  %v282_v16 = vld [vmem:[%s3808_s1 + $0x688] sm:$0xff] }
  0x6c   :  { %897 = vmatmul.mubr.f32.vlgmr.msra.gmra.mxu0 %v23_v17  ;;  %971 = vmatprep.mubr.f32.mxu1 %v26_v18  ;;  %v299_v15 = vld [vmem:[%s3808_s1 + $0x710] sm:$0xff]  ;;  %v314_v17 = vld [vmem:[%s3808_s1 + $0x788] sm:$0xff] }
  0x6d   :  { %1907 = vmatprep.subr.mxu0 %v296_v19  ;;  %1945 = vmatprep.subr.mxu1 %v328_v20  ;;  %v266_v18 = vld [vmem:[%s3808_s1 + $0x608] sm:$0xff]  ;;  %v281_v20 = vld [vmem:[%s3808_s1 + $0x680] sm:$0xff] }
  0x6e   :  { %972 = vmatmul.mubr.f32.vlgmr.msra.gmra.mxu1 %v25_v21  ;;  %1908 = vmatpush3.msra.mxu0 %v280_v22  ;;  %v298_v19 = vld [vmem:[%s3808_s1 + $0x708] sm:$0xff]  ;;  %v313_v21 = vld [vmem:[%s3808_s1 + $0x780] sm:$0xff] }
  0x6f   :  { %1946 = vmatpush3.msra.mxu1 %v312_v23  ;;  %1909 = vmatprep.subr.mxu0 %v295_v24  ;;  %v265_v22 = vld [vmem:[%s3808_s1 + $0x600] sm:$0xff]  ;;  %v28_v23 = vld [vmem:[%s3807_s0 + $0x68] sm:$0xff] }
  0x70   :  { %1947 = vmatprep.subr.mxu1 %v327_v25  ;;  %901 = vmatprep.mubr.f32.mxu0 %v53_v26  ;;  %v297_v24 = vld [vmem:[%s3808_s1 + $0x700] sm:$0xff]  ;;  %v30_v26 = vld [vmem:[%s3807_s0 + $0x78] sm:$0xff] }
  0x71   :  { %1910 = vmatpush3.msra.mxu0 %v279_v27  ;;  %1948 = vmatpush3.msra.mxu1 %v311_v28  ;;  %v27_v25 = vld [vmem:[%s3807_s0 + $0x60] sm:$0xff]  ;;  %v360_v27 = vld [vmem:[%s3808_s1 + $0x8f8] sm:$0xff] }
  0x72   :  { %902 = vmatmul.mubr.f32.gmra.mxu0 %v52_v29  ;;  %1911 = vmatprep.subr.mxu0 %v294_v30  ;;  %v392_v28 = vld [vmem:[%s3808_s1 + $0x9f8] sm:$0xff]  ;;  %v29_v29 = vld [vmem:[%s3807_s0 + $0x70] sm:$0xff] }
  0x73   :  { %1949 = vmatprep.subr.mxu1 %v326_v31  ;;  %976 = vmatprep.mubr.f32.mxu1 %v55_v32  ;;  %v344_v30 = vld [vmem:[%s3808_s1 + $0x878] sm:$0xff]  ;;  %v359_v32 = vld [vmem:[%s3808_s1 + $0x8f0] sm:$0xff] }
  0x74   :  { %1912 = vmatpush3.msra.mxu0 %v278_v33  ;;  %1950 = vmatpush3.msra.mxu1 %v310_v34  ;;  %v376_v31 = vld [vmem:[%s3808_s1 + $0x978] sm:$0xff]  ;;  %v391_v33 = vld [vmem:[%s3808_s1 + $0x9f0] sm:$0xff] }
  0x75   :  { %1913 = vmatprep.subr.mxu0 %v293_v35  ;;  %977 = vmatmul.mubr.f32.gmra.mxu1 %v54_v36  ;;  %v57_v34 = vld [vmem:[%s3807_s0 + $0x150] sm:$0xff] }
  0x76   :  { %1951 = vmatprep.subr.mxu1 %v325_v37  ;;  %1914 = vmatpush3.msra.mxu0 %v277_v38  ;;  %v343_v35 = vld [vmem:[%s3808_s1 + $0x870] sm:$0xff]  ;;  %v56_v37 = vld [vmem:[%s3807_s0 + $0x148] sm:$0xff] }
  0x77   :  { %1952 = vmatpush3.msra.mxu1 %v309_v39  ;;  %1915 = vmatprep.subr.mxu0 %v292_v40  ;;  %v375_v36 = vld [vmem:[%s3808_s1 + $0x970] sm:$0xff]  ;;  %v358_v38 = vld [vmem:[%s3808_s1 + $0x8e8] sm:$0xff]  ;;  %v59_v40 = vld [vmem:[%s3807_s0 + $0x160] sm:$0xff] }
  0x78   :  { %1953 = vmatprep.subr.mxu1 %v324_v41  ;;  %1916 = vmatpush3.msra.mxu0 %v276_v42  ;;  %v390_v39 = vld [vmem:[%s3808_s1 + $0x9e8] sm:$0xff] }
  0x79   :  { %1954 = vmatpush3.msra.mxu1 %v308_v43  ;;  %1917 = vmatprep.subr.mxu0 %v291_v44  ;;  %v342_v41 = vld [vmem:[%s3808_s1 + $0x868] sm:$0xff]  ;;  %v357_v43 = vld [vmem:[%s3808_s1 + $0x8e0] sm:$0xff]  ;;  %v58_v44 = vld [vmem:[%s3807_s0 + $0x158] sm:$0xff] }
  0x7a   :  { %1955 = vmatprep.subr.mxu1 %v323_v45  ;;  %1918 = vmatpush3.msra.mxu0 %v275_v46  ;;  %v374_v42 = vld [vmem:[%s3808_s1 + $0x968] sm:$0xff]  ;;  %v389_v45 = vld [vmem:[%s3808_s1 + $0x9e0] sm:$0xff] }
  0x7b   :  { %1956 = vmatpush3.msra.mxu1 %v307_v47  ;;  %1919 = vmatprep.subr.mxu0 %v290_v48  ;;  %v341_v46 = vld [vmem:[%s3808_s1 + $0x860] sm:$0xff]  ;;  %v356_v48 = vld [vmem:[%s3808_s1 + $0x8d8] sm:$0xff] }
  0x7c   :  { %1957 = vmatprep.subr.mxu1 %v322_v49  ;;  %1920 = vmatpush3.msra.mxu0 %v274_v50  ;;  %v373_v47 = vld [vmem:[%s3808_s1 + $0x960] sm:$0xff]  ;;  %v388_v49 = vld [vmem:[%s3808_s1 + $0x9d8] sm:$0xff] }
  0x7d   :  { %1958 = vmatpush3.msra.mxu1 %v306_v51  ;;  %1921 = vmatprep.subr.mxu0 %v289_v52  ;;  %v340_v50 = vld [vmem:[%s3808_s1 + $0x858] sm:$0xff]  ;;  %v355_v52 = vld [vmem:[%s3808_s1 + $0x8d0] sm:$0xff] }
  0x7e   :  { %1959 = vmatprep.subr.mxu1 %v321_v53  ;;  %1922 = vmatpush3.msra.mxu0 %v273_v54  ;;  %v372_v51 = vld [vmem:[%s3808_s1 + $0x958] sm:$0xff]  ;;  %v387_v53 = vld [vmem:[%s3808_s1 + $0x9d0] sm:$0xff] }
  0x7f   :  { %1960 = vmatpush3.msra.mxu1 %v305_v55  ;;  %1923 = vmatprep.subr.mxu0 %v288_v56  ;;  %v339_v54 = vld [vmem:[%s3808_s1 + $0x850] sm:$0xff]  ;;  %v354_v56 = vld [vmem:[%s3808_s1 + $0x8c8] sm:$0xff] }
  0x80   :  { %1961 = vmatprep.subr.mxu1 %v320_v57  ;;  %1924 = vmatpush3.msra.mxu0 %v272_v58  ;;  %v371_v55 = vld [vmem:[%s3808_s1 + $0x950] sm:$0xff]  ;;  %v386_v57 = vld [vmem:[%s3808_s1 + $0x9c8] sm:$0xff] }
  0x81   :  { %1962 = vmatpush3.msra.mxu1 %v304_v59  ;;  %1925 = vmatprep.subr.mxu0 %v287_v60  ;;  %v338_v58 = vld [vmem:[%s3808_s1 + $0x848] sm:$0xff]  ;;  %v353_v60 = vld [vmem:[%s3808_s1 + $0x8c0] sm:$0xff] }
  0x82   :  { %1963 = vmatprep.subr.mxu1 %v319_v61  ;;  %1926 = vmatpush3.msra.mxu0 %v271_v62  ;;  %v370_v59 = vld [vmem:[%s3808_s1 + $0x948] sm:$0xff]  ;;  %v385_v61 = vld [vmem:[%s3808_s1 + $0x9c0] sm:$0xff] }
  0x83   :  { %1964 = vmatpush3.msra.mxu1 %v303_v63  ;;  %1927 = vmatprep.subr.mxu0 %v286_v0  ;;  %v337_v62 = vld [vmem:[%s3808_s1 + $0x840] sm:$0xff]  ;;  %v352_v0 = vld [vmem:[%s3808_s1 + $0x8b8] sm:$0xff] }
  0x84   :  { %1965 = vmatprep.subr.mxu1 %v318_v1  ;;  %1928 = vmatpush3.msra.mxu0 %v270_v2  ;;  %v369_v63 = vld [vmem:[%s3808_s1 + $0x940] sm:$0xff]  ;;  %v384_v1 = vld [vmem:[%s3808_s1 + $0x9b8] sm:$0xff] }
  0x85   :  { %1966 = vmatpush3.msra.mxu1 %v302_v3  ;;  %1929 = vmatprep.subr.mxu0 %v285_v4  ;;  %v336_v2 = vld [vmem:[%s3808_s1 + $0x838] sm:$0xff]  ;;  %v351_v4 = vld [vmem:[%s3808_s1 + $0x8b0] sm:$0xff] }
  0x86   :  { %1967 = vmatprep.subr.mxu1 %v317_v5  ;;  %1930 = vmatpush3.msra.mxu0 %v269_v6  ;;  %v368_v3 = vld [vmem:[%s3808_s1 + $0x938] sm:$0xff]  ;;  %v383_v5 = vld [vmem:[%s3808_s1 + $0x9b0] sm:$0xff] }
  0x87   :  { %1968 = vmatpush3.msra.mxu1 %v301_v7  ;;  %1931 = vmatprep.subr.mxu0 %v284_v8  ;;  %v335_v6 = vld [vmem:[%s3808_s1 + $0x830] sm:$0xff]  ;;  %v350_v8 = vld [vmem:[%s3808_s1 + $0x8a8] sm:$0xff] }
  0x88   :  { %1969 = vmatprep.subr.mxu1 %v316_v9  ;;  %1932 = vmatpush3.msra.mxu0 %v268_v10  ;;  %v367_v7 = vld [vmem:[%s3808_s1 + $0x930] sm:$0xff]  ;;  %v382_v9 = vld [vmem:[%s3808_s1 + $0x9a8] sm:$0xff] }
  0x89   :  { %1970 = vmatpush3.msra.mxu1 %v300_v11  ;;  %1933 = vmatprep.subr.mxu0 %v283_v12  ;;  %v334_v10 = vld [vmem:[%s3808_s1 + $0x828] sm:$0xff]  ;;  %v349_v12 = vld [vmem:[%s3808_s1 + $0x8a0] sm:$0xff] }
  0x8a   :  { %1971 = vmatprep.subr.mxu1 %v315_v13  ;;  %1934 = vmatpush3.msra.mxu0 %v267_v14  ;;  %v366_v11 = vld [vmem:[%s3808_s1 + $0x928] sm:$0xff]  ;;  %v381_v13 = vld [vmem:[%s3808_s1 + $0x9a0] sm:$0xff] }
  0x8b   :  { %1972 = vmatpush3.msra.mxu1 %v299_v15  ;;  %1935 = vmatprep.subr.mxu0 %v282_v16  ;;  %v333_v14 = vld [vmem:[%s3808_s1 + $0x820] sm:$0xff]  ;;  %v348_v16 = vld [vmem:[%s3808_s1 + $0x898] sm:$0xff] }
  0x8c   :  { %1973 = vmatprep.subr.mxu1 %v314_v17  ;;  %1936 = vmatpush3.msra.mxu0 %v266_v18  ;;  %v365_v15 = vld [vmem:[%s3808_s1 + $0x920] sm:$0xff]  ;;  %v380_v17 = vld [vmem:[%s3808_s1 + $0x998] sm:$0xff] }
  0x8d   :  { %1974 = vmatpush3.msra.mxu1 %v298_v19  ;;  %1937 = vmatprep.subr.mxu0 %v281_v20  ;;  %v332_v18 = vld [vmem:[%s3808_s1 + $0x818] sm:$0xff]  ;;  %v347_v20 = vld [vmem:[%s3808_s1 + $0x890] sm:$0xff] }
  0x8e   :  { %1975 = vmatprep.subr.mxu1 %v313_v21  ;;  %1938 = vmatpush3.msra.mxu0 %v265_v22  ;;  %v364_v19 = vld [vmem:[%s3808_s1 + $0x918] sm:$0xff]  ;;  %v379_v21 = vld [vmem:[%s3808_s1 + $0x990] sm:$0xff] }
  0x8f   :  { %1046 = vmatprep.mubr.f32.mxu0 %v28_v23  ;;  %1976 = vmatpush3.msra.mxu1 %v297_v24  ;;  %v331_v22 = vld [vmem:[%s3808_s1 + $0x810] sm:$0xff]  ;;  %v346_v24 = vld [vmem:[%s3808_s1 + $0x888] sm:$0xff] }
  0x90   :  { %1047 = vmatmul.mubr.f32.vlgmr.msra.gmra.mxu0 %v27_v25  ;;  %1121 = vmatprep.mubr.f32.mxu1 %v30_v26  ;;  %v363_v23 = vld [vmem:[%s3808_s1 + $0x910] sm:$0xff]  ;;  %v378_v25 = vld [vmem:[%s3808_s1 + $0x988] sm:$0xff] }
  0x91   :  { %1983 = vmatprep.subr.mxu0 %v360_v27  ;;  %2021 = vmatprep.subr.mxu1 %v392_v28 }
  0x92   :  { %1122 = vmatmul.mubr.f32.vlgmr.msra.gmra.mxu1 %v29_v29  ;;  %1984 = vmatpush3.msra.mxu0 %v344_v30 }
  0x93   :  { %2022 = vmatpush3.msra.mxu1 %v376_v31  ;;  %1985 = vmatprep.subr.mxu0 %v359_v32 }
  0x94   :  { %2023 = vmatprep.subr.mxu1 %v391_v33  ;;  %1051 = vmatprep.mubr.f32.mxu0 %v57_v34 }
  0x95   :  { %1986 = vmatpush3.msra.mxu0 %v343_v35  ;;  %2024 = vmatpush3.msra.mxu1 %v375_v36 }
  0x96   :  { %1052 = vmatmul.mubr.f32.gmra.mxu0 %v56_v37  ;;  %1987 = vmatprep.subr.mxu0 %v358_v38 }
  0x97   :  { %2025 = vmatprep.subr.mxu1 %v390_v39  ;;  %1126 = vmatprep.mubr.f32.mxu1 %v59_v40 }
  0x98   :  { %1988 = vmatpush3.msra.mxu0 %v342_v41  ;;  %2026 = vmatpush3.msra.mxu1 %v374_v42 }
  0x99   :  { %1989 = vmatprep.subr.mxu0 %v357_v43  ;;  %1127 = vmatmul.mubr.f32.gmra.mxu1 %v58_v44 }
  0x9a   :  { %2027 = vmatprep.subr.mxu1 %v389_v45  ;;  %1990 = vmatpush3.msra.mxu0 %v341_v46 }
  0x9b   :  { %2028 = vmatpush3.msra.mxu1 %v373_v47  ;;  %1991 = vmatprep.subr.mxu0 %v356_v48 }
  0x9c   :  { %2029 = vmatprep.subr.mxu1 %v388_v49  ;;  %1992 = vmatpush3.msra.mxu0 %v340_v50 }
  0x9d   :  { %2030 = vmatpush3.msra.mxu1 %v372_v51  ;;  %1993 = vmatprep.subr.mxu0 %v355_v52 }
  0x9e   :  { %2031 = vmatprep.subr.mxu1 %v387_v53  ;;  %1994 = vmatpush3.msra.mxu0 %v339_v54 }
  0x9f   :  { %2032 = vmatpush3.msra.mxu1 %v371_v55  ;;  %1995 = vmatprep.subr.mxu0 %v354_v56 }
  0xa0   :  { %2033 = vmatprep.subr.mxu1 %v386_v57  ;;  %1996 = vmatpush3.msra.mxu0 %v338_v58 }
  0xa1   :  { %2034 = vmatpush3.msra.mxu1 %v370_v59  ;;  %1997 = vmatprep.subr.mxu0 %v353_v60 }
  0xa2   :  { %2035 = vmatprep.subr.mxu1 %v385_v61  ;;  %1998 = vmatpush3.msra.mxu0 %v337_v62 }
  0xa3   :  { %2036 = vmatpush3.msra.mxu1 %v369_v63  ;;  %1999 = vmatprep.subr.mxu0 %v352_v0 }
  0xa4   :  { %2037 = vmatprep.subr.mxu1 %v384_v1  ;;  %2000 = vmatpush3.msra.mxu0 %v336_v2 }
  0xa5   :  { %2038 = vmatpush3.msra.mxu1 %v368_v3  ;;  %2001 = vmatprep.subr.mxu0 %v351_v4 }
  0xa6   :  { %2039 = vmatprep.subr.mxu1 %v383_v5  ;;  %2002 = vmatpush3.msra.mxu0 %v335_v6 }
  0xa7   :  { %2040 = vmatpush3.msra.mxu1 %v367_v7  ;;  %2003 = vmatprep.subr.mxu0 %v350_v8 }
  0xa8   :  { %2041 = vmatprep.subr.mxu1 %v382_v9  ;;  %2004 = vmatpush3.msra.mxu0 %v334_v10 }
  0xa9   :  { %2042 = vmatpush3.msra.mxu1 %v366_v11  ;;  %2005 = vmatprep.subr.mxu0 %v349_v12 }
  0xaa   :  { %2043 = vmatprep.subr.mxu1 %v381_v13  ;;  %2006 = vmatpush3.msra.mxu0 %v333_v14 }
  0xab   :  { %2044 = vmatpush3.msra.mxu1 %v365_v15  ;;  %2007 = vmatprep.subr.mxu0 %v348_v16 }
  0xac   :  { %2045 = vmatprep.subr.mxu1 %v380_v17  ;;  %2008 = vmatpush3.msra.mxu0 %v332_v18 }
  0xad   :  { %2046 = vmatpush3.msra.mxu1 %v364_v19 }
  0xae   :  { %8 = vsyncpa [#allocation3], 0  ;;  %2009 = vmatprep.subr.mxu0 %v347_v20  ;;  %2047 = vmatprep.subr.mxu1 %v379_v21  ;;  %v330_v26 = vld [vmem:[%s3808_s1 + $0x808] sm:$0xff]  ;;  %v345_v28 = vld [vmem:[%s3808_s1 + $0x880] sm:$0xff]  ;;  %vm525_vm0 = vcmask 130048  }
  0xaf   :  { %v362_v27 = vld [vmem:[%s3808_s1 + $0x908] sm:$0xff]  ;;  %2010 = vmatpush3.msra.mxu0 %v331_v22  ;;  %2048 = vmatpush3.msra.mxu1 %v363_v23  ;;  %v377_v29 = vld [vmem:[%s3808_s1 + $0x980] sm:$0xff]  ;;  %v34_v34 = vld [vmem:[%s3807_s0 + $0x98] sm:$0xff] }
  0xb0   :  { %2011 = vmatprep.subr.mxu0 %v346_v24  ;;  %2049 = vmatprep.subr.mxu1 %v378_v25  ;;  %v329_v30 = vld [vmem:[%s3808_s1 + $0x800] sm:$0xff]  ;;  %v32_v31 = vld [vmem:[%s3807_s0 + $0x88] sm:$0xff]  ;;  %v424_v35 = vld [vmem:[%s3808_s1 + $0xaf8] sm:$0xff] }
  0xb1   :  { %2012 = vmatpush3.msra.mxu0 %v330_v26  ;;  %2050 = vmatpush3.msra.mxu1 %v362_v27  ;;  %v361_v32 = vld [vmem:[%s3808_s1 + $0x900] sm:$0xff]  ;;  %v456_v36 = vld [vmem:[%s3808_s1 + $0xbf8] sm:$0xff]  ;;  %v33_v37 = vld [vmem:[%s3807_s0 + $0x90] sm:$0xff] }
  0xb2   :  { %v31_v33 = vld [vmem:[%s3807_s0 + $0x80] sm:$0xff]  ;;  %2013 = vmatprep.subr.mxu0 %v345_v28  ;;  %2051 = vmatprep.subr.mxu1 %v377_v29  ;;  %v408_v38 = vld [vmem:[%s3808_s1 + $0xa78] sm:$0xff]  ;;  %v423_v40 = vld [vmem:[%s3808_s1 + $0xaf0] sm:$0xff] }
  0xb3   :  { %2014 = vmatpush3.msra.mxu0 %v329_v30  ;;  %1196 = vmatprep.mubr.f32.mxu0 %v32_v31  ;;  %v440_v39 = vld [vmem:[%s3808_s1 + $0xb78] sm:$0xff]  ;;  %v455_v41 = vld [vmem:[%s3808_s1 + $0xbf0] sm:$0xff]  ;;  %v60_v45 = vld [vmem:[%s3807_s0 + $0x168] sm:$0xff] }
  0xb4   :  { %2052 = vmatpush3.msra.mxu1 %v361_v32  ;;  %1197 = vmatmul.mubr.f32.vlgmr.msra.gmra.mxu0 %v31_v33  ;;  %v61_v42 = vld [vmem:[%s3807_s0 + $0x170] sm:$0xff]  ;;  %v422_v46 = vld [vmem:[%s3808_s1 + $0xae8] sm:$0xff]  ;;  %v63_v48 = vld [vmem:[%s3807_s0 + $0x180] sm:$0xff] }
  0xb5   :  { %1271 = vmatprep.mubr.f32.mxu1 %v34_v34  ;;  %2059 = vmatprep.subr.mxu0 %v424_v35  ;;  %v407_v43 = vld [vmem:[%s3808_s1 + $0xa70] sm:$0xff]  ;;  %v454_v47 = vld [vmem:[%s3808_s1 + $0xbe8] sm:$0xff]  ;;  %v421_v51 = vld [vmem:[%s3808_s1 + $0xae0] sm:$0xff] }
  0xb6   :  { %2097 = vmatprep.subr.mxu1 %v456_v36  ;;  %1272 = vmatmul.mubr.f32.vlgmr.msra.gmra.mxu1 %v33_v37  ;;  %v439_v44 = vld [vmem:[%s3808_s1 + $0xb70] sm:$0xff]  ;;  %v406_v49 = vld [vmem:[%s3808_s1 + $0xa68] sm:$0xff]  ;;  %v62_v52 = vld [vmem:[%s3807_s0 + $0x178] sm:$0xff] }
  0xb7   :  { %2060 = vmatpush3.msra.mxu0 %v408_v38  ;;  %2098 = vmatpush3.msra.mxu1 %v440_v39  ;;  %v438_v50 = vld [vmem:[%s3808_s1 + $0xb68] sm:$0xff]  ;;  %v453_v53 = vld [vmem:[%s3808_s1 + $0xbe0] sm:$0xff]  ;;  %v420_v56 = vld [vmem:[%s3808_s1 + $0xad8] sm:$0xff] }
  0xb8   :  { %2061 = vmatprep.subr.mxu0 %v423_v40  ;;  %2099 = vmatprep.subr.mxu1 %v455_v41  ;;  %v405_v54 = vld [vmem:[%s3808_s1 + $0xa60] sm:$0xff]  ;;  %v452_v57 = vld [vmem:[%s3808_s1 + $0xbd8] sm:$0xff]  ;;  %v419_v60 = vld [vmem:[%s3808_s1 + $0xad0] sm:$0xff] }
  0xb9   :  { %1201 = vmatprep.mubr.f32.mxu0 %v61_v42  ;;  %2062 = vmatpush3.msra.mxu0 %v407_v43  ;;  %v437_v55 = vld [vmem:[%s3808_s1 + $0xb60] sm:$0xff]  ;;  %v404_v58 = vld [vmem:[%s3808_s1 + $0xa58] sm:$0xff]  ;;  %v451_v61 = vld [vmem:[%s3808_s1 + $0xbd0] sm:$0xff] }
  0xba   :  { %2100 = vmatpush3.msra.mxu1 %v439_v44  ;;  %1202 = vmatmul.mubr.f32.gmra.mxu0 %v60_v45  ;;  %v436_v59 = vld [vmem:[%s3808_s1 + $0xb58] sm:$0xff]  ;;  %v403_v62 = vld [vmem:[%s3808_s1 + $0xa50] sm:$0xff]  ;;  %v418_v0 = vld [vmem:[%s3808_s1 + $0xac8] sm:$0xff] }
  0xbb   :  { %2063 = vmatprep.subr.mxu0 %v422_v46  ;;  %2101 = vmatprep.subr.mxu1 %v454_v47  ;;  %v435_v63 = vld [vmem:[%s3808_s1 + $0xb50] sm:$0xff]  ;;  %v450_v1 = vld [vmem:[%s3808_s1 + $0xbc8] sm:$0xff]  ;;  %v417_v4 = vld [vmem:[%s3808_s1 + $0xac0] sm:$0xff] }
  0xbc   :  { %1276 = vmatprep.mubr.f32.mxu1 %v63_v48  ;;  %2064 = vmatpush3.msra.mxu0 %v406_v49  ;;  %v402_v2 = vld [vmem:[%s3808_s1 + $0xa48] sm:$0xff]  ;;  %v449_v5 = vld [vmem:[%s3808_s1 + $0xbc0] sm:$0xff]  ;;  %v416_v8 = vld [vmem:[%s3808_s1 + $0xab8] sm:$0xff] }
  0xbd   :  { %2102 = vmatpush3.msra.mxu1 %v438_v50  ;;  %2065 = vmatprep.subr.mxu0 %v421_v51  ;;  %v434_v3 = vld [vmem:[%s3808_s1 + $0xb48] sm:$0xff]  ;;  %v401_v6 = vld [vmem:[%s3808_s1 + $0xa40] sm:$0xff]  ;;  %v448_v9 = vld [vmem:[%s3808_s1 + $0xbb8] sm:$0xff] }
  0xbe   :  { %1277 = vmatmul.mubr.f32.gmra.mxu1 %v62_v52  ;;  %2103 = vmatprep.subr.mxu1 %v453_v53  ;;  %v433_v7 = vld [vmem:[%s3808_s1 + $0xb40] sm:$0xff]  ;;  %v400_v10 = vld [vmem:[%s3808_s1 + $0xa38] sm:$0xff]  ;;  %v415_v12 = vld [vmem:[%s3808_s1 + $0xab0] sm:$0xff] }
  0xbf   :  { %2066 = vmatpush3.msra.mxu0 %v405_v54  ;;  %2104 = vmatpush3.msra.mxu1 %v437_v55  ;;  %v432_v11 = vld [vmem:[%s3808_s1 + $0xb38] sm:$0xff]  ;;  %v447_v13 = vld [vmem:[%s3808_s1 + $0xbb0] sm:$0xff]  ;;  %v414_v16 = vld [vmem:[%s3808_s1 + $0xaa8] sm:$0xff] }
  0xc0   :  { %2067 = vmatprep.subr.mxu0 %v420_v56  ;;  %2105 = vmatprep.subr.mxu1 %v452_v57  ;;  %v399_v14 = vld [vmem:[%s3808_s1 + $0xa30] sm:$0xff]  ;;  %v446_v17 = vld [vmem:[%s3808_s1 + $0xba8] sm:$0xff]  ;;  %v413_v20 = vld [vmem:[%s3808_s1 + $0xaa0] sm:$0xff] }
  0xc1   :  { %2068 = vmatpush3.msra.mxu0 %v404_v58  ;;  %2106 = vmatpush3.msra.mxu1 %v436_v59  ;;  %v431_v15 = vld [vmem:[%s3808_s1 + $0xb30] sm:$0xff]  ;;  %v398_v18 = vld [vmem:[%s3808_s1 + $0xa28] sm:$0xff]  ;;  %v445_v21 = vld [vmem:[%s3808_s1 + $0xba0] sm:$0xff] }
  0xc2   :  { %2069 = vmatprep.subr.mxu0 %v419_v60  ;;  %2107 = vmatprep.subr.mxu1 %v451_v61  ;;  %v430_v19 = vld [vmem:[%s3808_s1 + $0xb28] sm:$0xff]  ;;  %v397_v22 = vld [vmem:[%s3808_s1 + $0xa20] sm:$0xff]  ;;  %v412_v24 = vld [vmem:[%s3808_s1 + $0xa98] sm:$0xff] }
  0xc3   :  { %2070 = vmatpush3.msra.mxu0 %v403_v62  ;;  %2108 = vmatpush3.msra.mxu1 %v435_v63  ;;  %v429_v23 = vld [vmem:[%s3808_s1 + $0xb20] sm:$0xff]  ;;  %v444_v25 = vld [vmem:[%s3808_s1 + $0xb98] sm:$0xff]  ;;  %v411_v28 = vld [vmem:[%s3808_s1 + $0xa90] sm:$0xff] }
  0xc4   :  { %2071 = vmatprep.subr.mxu0 %v418_v0  ;;  %2109 = vmatprep.subr.mxu1 %v450_v1  ;;  %v396_v26 = vld [vmem:[%s3808_s1 + $0xa18] sm:$0xff]  ;;  %v443_v29 = vld [vmem:[%s3808_s1 + $0xb90] sm:$0xff]  ;;  %v410_v32 = vld [vmem:[%s3808_s1 + $0xa88] sm:$0xff] }
  0xc5   :  { %2072 = vmatpush3.msra.mxu0 %v402_v2  ;;  %2110 = vmatpush3.msra.mxu1 %v434_v3  ;;  %v428_v27 = vld [vmem:[%s3808_s1 + $0xb18] sm:$0xff]  ;;  %v395_v30 = vld [vmem:[%s3808_s1 + $0xa10] sm:$0xff]  ;;  %v442_v33 = vld [vmem:[%s3808_s1 + $0xb88] sm:$0xff] }
  0xc6   :  { %2073 = vmatprep.subr.mxu0 %v417_v4  ;;  %2111 = vmatprep.subr.mxu1 %v449_v5  ;;  %v427_v31 = vld [vmem:[%s3808_s1 + $0xb10] sm:$0xff]  ;;  %v394_v34 = vld [vmem:[%s3808_s1 + $0xa08] sm:$0xff]  ;;  %v409_v36 = vld [vmem:[%s3808_s1 + $0xa80] sm:$0xff] }
  0xc7   :  { %2074 = vmatpush3.msra.mxu0 %v401_v6  ;;  %2112 = vmatpush3.msra.mxu1 %v433_v7  ;;  %v426_v35 = vld [vmem:[%s3808_s1 + $0xb08] sm:$0xff]  ;;  %v441_v37 = vld [vmem:[%s3808_s1 + $0xb80] sm:$0xff]  ;;  %v38_v42 = vld [vmem:[%s3807_s0 + $0xb8] sm:$0xff] }
  0xc8   :  { %2075 = vmatprep.subr.mxu0 %v416_v8  ;;  %2113 = vmatprep.subr.mxu1 %v448_v9  ;;  %v393_v38 = vld [vmem:[%s3808_s1 + $0xa00] sm:$0xff]  ;;  %v36_v39 = vld [vmem:[%s3807_s0 + $0xa8] sm:$0xff]  ;;  %v488_v43 = vld [vmem:[%s3808_s1 + $0xcf8] sm:$0xff] }
  0xc9   :  { %2076 = vmatpush3.msra.mxu0 %v400_v10  ;;  %2114 = vmatpush3.msra.mxu1 %v432_v11  ;;  %v425_v40 = vld [vmem:[%s3808_s1 + $0xb00] sm:$0xff]  ;;  %v520_v44 = vld [vmem:[%s3808_s1 + $0xdf8] sm:$0xff]  ;;  %v37_v45 = vld [vmem:[%s3807_s0 + $0xb0] sm:$0xff] }
  0xca   :  { %2077 = vmatprep.subr.mxu0 %v415_v12  ;;  %2115 = vmatprep.subr.mxu1 %v447_v13  ;;  %v35_v41 = vld [vmem:[%s3807_s0 + $0xa0] sm:$0xff]  ;;  %v472_v46 = vld [vmem:[%s3808_s1 + $0xc78] sm:$0xff]  ;;  %v487_v48 = vld [vmem:[%s3808_s1 + $0xcf0] sm:$0xff] }
  0xcb   :  { %2078 = vmatpush3.msra.mxu0 %v399_v14  ;;  %2116 = vmatpush3.msra.mxu1 %v431_v15  ;;  %v504_v47 = vld [vmem:[%s3808_s1 + $0xd78] sm:$0xff]  ;;  %v519_v49 = vld [vmem:[%s3808_s1 + $0xdf0] sm:$0xff]  ;;  %v64_v53 = vld [vmem:[%s3807_s0 + $0x188] sm:$0xff] }
  0xcc   :  { %2079 = vmatprep.subr.mxu0 %v414_v16  ;;  %2117 = vmatprep.subr.mxu1 %v446_v17  ;;  %v65_v50 = vld [vmem:[%s3807_s0 + $0x190] sm:$0xff]  ;;  %v486_v54 = vld [vmem:[%s3808_s1 + $0xce8] sm:$0xff]  ;;  %v67_v56 = vld [vmem:[%s3807_s0 + $0x1a0] sm:$0xff] }
  0xcd   :  { %2080 = vmatpush3.msra.mxu0 %v398_v18  ;;  %2118 = vmatpush3.msra.mxu1 %v430_v19  ;;  %v471_v51 = vld [vmem:[%s3808_s1 + $0xc70] sm:$0xff]  ;;  %v518_v55 = vld [vmem:[%s3808_s1 + $0xde8] sm:$0xff]  ;;  %v485_v59 = vld [vmem:[%s3808_s1 + $0xce0] sm:$0xff] }
  0xce   :  { %2081 = vmatprep.subr.mxu0 %v413_v20  ;;  %2119 = vmatprep.subr.mxu1 %v445_v21  ;;  %v503_v52 = vld [vmem:[%s3808_s1 + $0xd70] sm:$0xff]  ;;  %v470_v57 = vld [vmem:[%s3808_s1 + $0xc68] sm:$0xff]  ;;  %v66_v60 = vld [vmem:[%s3807_s0 + $0x198] sm:$0xff] }
  0xcf   :  { %2082 = vmatpush3.msra.mxu0 %v397_v22  ;;  %2120 = vmatpush3.msra.mxu1 %v429_v23  ;;  %v502_v58 = vld [vmem:[%s3808_s1 + $0xd68] sm:$0xff]  ;;  %v517_v61 = vld [vmem:[%s3808_s1 + $0xde0] sm:$0xff]  ;;  %v484_v0 = vld [vmem:[%s3808_s1 + $0xcd8] sm:$0xff] }
  0xd0   :  { %2083 = vmatprep.subr.mxu0 %v412_v24  ;;  %2121 = vmatprep.subr.mxu1 %v444_v25  ;;  %v469_v62 = vld [vmem:[%s3808_s1 + $0xc60] sm:$0xff]  ;;  %v516_v1 = vld [vmem:[%s3808_s1 + $0xdd8] sm:$0xff]  ;;  %v483_v4 = vld [vmem:[%s3808_s1 + $0xcd0] sm:$0xff] }
  0xd1   :  { %2084 = vmatpush3.msra.mxu0 %v396_v26  ;;  %2122 = vmatpush3.msra.mxu1 %v428_v27  ;;  %v501_v63 = vld [vmem:[%s3808_s1 + $0xd60] sm:$0xff]  ;;  %v468_v2 = vld [vmem:[%s3808_s1 + $0xc58] sm:$0xff]  ;;  %v515_v5 = vld [vmem:[%s3808_s1 + $0xdd0] sm:$0xff] }
  0xd2   :  { %2085 = vmatprep.subr.mxu0 %v411_v28  ;;  %2123 = vmatprep.subr.mxu1 %v443_v29  ;;  %v500_v3 = vld [vmem:[%s3808_s1 + $0xd58] sm:$0xff]  ;;  %v467_v6 = vld [vmem:[%s3808_s1 + $0xc50] sm:$0xff]  ;;  %v482_v8 = vld [vmem:[%s3808_s1 + $0xcc8] sm:$0xff] }
  0xd3   :  { %2086 = vmatpush3.msra.mxu0 %v395_v30  ;;  %2124 = vmatpush3.msra.mxu1 %v427_v31  ;;  %v499_v7 = vld [vmem:[%s3808_s1 + $0xd50] sm:$0xff]  ;;  %v514_v9 = vld [vmem:[%s3808_s1 + $0xdc8] sm:$0xff]  ;;  %v481_v12 = vld [vmem:[%s3808_s1 + $0xcc0] sm:$0xff] }
  0xd4   :  { %2087 = vmatprep.subr.mxu0 %v410_v32  ;;  %2125 = vmatprep.subr.mxu1 %v442_v33  ;;  %v466_v10 = vld [vmem:[%s3808_s1 + $0xc48] sm:$0xff]  ;;  %v513_v13 = vld [vmem:[%s3808_s1 + $0xdc0] sm:$0xff]  ;;  %v480_v16 = vld [vmem:[%s3808_s1 + $0xcb8] sm:$0xff] }
  0xd5   :  { %2088 = vmatpush3.msra.mxu0 %v394_v34  ;;  %2126 = vmatpush3.msra.mxu1 %v426_v35  ;;  %v498_v11 = vld [vmem:[%s3808_s1 + $0xd48] sm:$0xff]  ;;  %v465_v14 = vld [vmem:[%s3808_s1 + $0xc40] sm:$0xff]  ;;  %v512_v17 = vld [vmem:[%s3808_s1 + $0xdb8] sm:$0xff] }
  0xd6   :  { %2089 = vmatprep.subr.mxu0 %v409_v36  ;;  %2127 = vmatprep.subr.mxu1 %v441_v37  ;;  %v497_v15 = vld [vmem:[%s3808_s1 + $0xd40] sm:$0xff]  ;;  %v464_v18 = vld [vmem:[%s3808_s1 + $0xc38] sm:$0xff]  ;;  %v479_v20 = vld [vmem:[%s3808_s1 + $0xcb0] sm:$0xff] }
  0xd7   :  { %2090 = vmatpush3.msra.mxu0 %v393_v38  ;;  %1346 = vmatprep.mubr.f32.mxu0 %v36_v39  ;;  %v496_v19 = vld [vmem:[%s3808_s1 + $0xd38] sm:$0xff]  ;;  %v511_v21 = vld [vmem:[%s3808_s1 + $0xdb0] sm:$0xff]  ;;  %v478_v24 = vld [vmem:[%s3808_s1 + $0xca8] sm:$0xff] }
  0xd8   :  { %2128 = vmatpush3.msra.mxu1 %v425_v40  ;;  %1347 = vmatmul.mubr.f32.vlgmr.msra.gmra.mxu0 %v35_v41  ;;  %v463_v22 = vld [vmem:[%s3808_s1 + $0xc30] sm:$0xff]  ;;  %v510_v25 = vld [vmem:[%s3808_s1 + $0xda8] sm:$0xff]  ;;  %v477_v28 = vld [vmem:[%s3808_s1 + $0xca0] sm:$0xff] }
  0xd9   :  { %1421 = vmatprep.mubr.f32.mxu1 %v38_v42  ;;  %2135 = vmatprep.subr.mxu0 %v488_v43  ;;  %v495_v23 = vld [vmem:[%s3808_s1 + $0xd30] sm:$0xff]  ;;  %v462_v26 = vld [vmem:[%s3808_s1 + $0xc28] sm:$0xff]  ;;  %v509_v29 = vld [vmem:[%s3808_s1 + $0xda0] sm:$0xff] }
  0xda   :  { %2173 = vmatprep.subr.mxu1 %v520_v44  ;;  %1422 = vmatmul.mubr.f32.vlgmr.msra.gmra.mxu1 %v37_v45  ;;  %v494_v27 = vld [vmem:[%s3808_s1 + $0xd28] sm:$0xff]  ;;  %v461_v30 = vld [vmem:[%s3808_s1 + $0xc20] sm:$0xff]  ;;  %v476_v32 = vld [vmem:[%s3808_s1 + $0xc98] sm:$0xff] }
  0xdb   :  { %2136 = vmatpush3.msra.mxu0 %v472_v46  ;;  %2174 = vmatpush3.msra.mxu1 %v504_v47  ;;  %v493_v31 = vld [vmem:[%s3808_s1 + $0xd20] sm:$0xff]  ;;  %v508_v33 = vld [vmem:[%s3808_s1 + $0xd98] sm:$0xff]  ;;  %v475_v36 = vld [vmem:[%s3808_s1 + $0xc90] sm:$0xff] }
  0xdc   :  { %2137 = vmatprep.subr.mxu0 %v487_v48  ;;  %2175 = vmatprep.subr.mxu1 %v519_v49  ;;  %v460_v34 = vld [vmem:[%s3808_s1 + $0xc18] sm:$0xff]  ;;  %v507_v37 = vld [vmem:[%s3808_s1 + $0xd90] sm:$0xff]  ;;  %v474_v40 = vld [vmem:[%s3808_s1 + $0xc88] sm:$0xff] }
  0xdd   :  { %1351 = vmatprep.mubr.f32.mxu0 %v65_v50  ;;  %2138 = vmatpush3.msra.mxu0 %v471_v51  ;;  %v492_v35 = vld [vmem:[%s3808_s1 + $0xd18] sm:$0xff]  ;;  %v459_v38 = vld [vmem:[%s3808_s1 + $0xc10] sm:$0xff]  ;;  %v506_v41 = vld [vmem:[%s3808_s1 + $0xd88] sm:$0xff] }
  0xde   :  { %2176 = vmatpush3.msra.mxu1 %v503_v52  ;;  %1352 = vmatmul.mubr.f32.gmra.mxu0 %v64_v53  ;;  %v491_v39 = vld [vmem:[%s3808_s1 + $0xd10] sm:$0xff]  ;;  %v458_v42 = vld [vmem:[%s3808_s1 + $0xc08] sm:$0xff]  ;;  %v473_v44 = vld [vmem:[%s3808_s1 + $0xc80] sm:$0xff] }
  0xdf   :  { %2139 = vmatprep.subr.mxu0 %v486_v54  ;;  %2177 = vmatprep.subr.mxu1 %v518_v55  ;;  %v490_v43 = vld [vmem:[%s3808_s1 + $0xd08] sm:$0xff]  ;;  %v505_v45 = vld [vmem:[%s3808_s1 + $0xd80] sm:$0xff]  ;;  %v42_v49 = vld [vmem:[%s3807_s0 + $0xd8] sm:$0xff] }
  0xe0   :  { %1426 = vmatprep.mubr.f32.mxu1 %v67_v56  ;;  %2140 = vmatpush3.msra.mxu0 %v470_v57  ;;  %v457_v46 = vld [vmem:[%s3808_s1 + $0xc00] sm:$0xff]  ;;  %v40_v47 = vld [vmem:[%s3807_s0 + $0xc8] sm:$0xff]  ;;  %v41_v51 = vld [vmem:[%s3807_s0 + $0xd0] sm:$0xff] }
  0xe1   :  { %2178 = vmatpush3.msra.mxu1 %v502_v58  ;;  %2141 = vmatprep.subr.mxu0 %v485_v59  ;;  %v489_v48 = vld [vmem:[%s3808_s1 + $0xd00] sm:$0xff]  ;;  %v522_v52 = vld [vmem:[%s3808_s1 + $0xe08] sm:$0xff]  ;;  %v69_v53 = vld [vmem:[%s3807_s0 + $0x1b0] sm:$0xff] }
  0xe2   :  { %1427 = vmatmul.mubr.f32.gmra.mxu1 %v66_v60  ;;  %2179 = vmatprep.subr.mxu1 %v517_v61  ;;  %v39_v50 = vld [vmem:[%s3807_s0 + $0xc0] sm:$0xff]  ;;  %v68_v56 = vld [vmem:[%s3807_s0 + $0x1a8] sm:$0xff]  ;;  %v70_v57 = vld [vmem:[%s3807_s0 + $0x1b8] sm:$0xff] }
  0xe3   :  { %2142 = vmatpush3.msra.mxu0 %v469_v62  ;;  %2180 = vmatpush3.msra.mxu1 %v501_v63  ;;  %v71_v54 = vld [vmem:[%s3807_s0 + $0x1c0] sm:$0xff]  ;;  %v72_v59 = vld [vmem:[%s3807_s0 + $0x1c8] sm:$0xff] }
  0xe4   :  { %2143 = vmatprep.subr.mxu0 %v484_v0  ;;  %2181 = vmatprep.subr.mxu1 %v516_v1  ;;  %v521_v55 = vld [vmem:[%s3808_s1 + $0xe00] sm:$0xff]  ;;  %v1711_v60 = vpop.f32.mrf.mxu0 }
  0xe5   :  { %2144 = vmatpush3.msra.mxu0 %v468_v2  ;;  %2182 = vmatpush3.msra.mxu1 %v500_v3  ;;  %v43_v58 = vld [vmem:[%s3807_s0 + $0xe0] sm:$0xff] }
  0xe6   :  { %2145 = vmatprep.subr.mxu0 %v483_v4  ;;  %2183 = vmatprep.subr.mxu1 %v515_v5  ;;  %v1749_v61 = vpop.f32.mrf.mxu1  ;;  %v1712_v62 = vpop.f32.mrf.mxu0 }
  0xe7   :  { %2146 = vmatpush3.msra.mxu0 %v467_v6  ;;  %2184 = vmatpush3.msra.mxu1 %v499_v7 }
  0xe8   :  { %2147 = vmatprep.subr.mxu0 %v482_v8  ;;  %2185 = vmatprep.subr.mxu1 %v514_v9  ;;  %v1750_v63 = vpop.f32.mrf.mxu1 }
  0xe9   :  { %2148 = vmatpush3.msra.mxu0 %v466_v10  ;;  %2186 = vmatpush3.msra.mxu1 %v498_v11 }
  0xea   :  { %2149 = vmatprep.subr.mxu0 %v481_v12  ;;  %2187 = vmatprep.subr.mxu1 %v513_v13 }
  0xeb   :  { %2150 = vmatpush3.msra.mxu0 %v465_v14  ;;  %2188 = vmatpush3.msra.mxu1 %v497_v15 }
  0xec   :  { %2151 = vmatprep.subr.mxu0 %v480_v16  ;;  %2189 = vmatprep.subr.mxu1 %v512_v17 }
  0xed   :  { %2152 = vmatpush3.msra.mxu0 %v464_v18  ;;  %2190 = vmatpush3.msra.mxu1 %v496_v19 }
  0xee   :  { %2153 = vmatprep.subr.mxu0 %v479_v20  ;;  %2191 = vmatprep.subr.mxu1 %v511_v21 }
  0xef   :  { %2154 = vmatpush3.msra.mxu0 %v463_v22  ;;  %2192 = vmatpush3.msra.mxu1 %v495_v23 }
  0xf0   :  { %2155 = vmatprep.subr.mxu0 %v478_v24  ;;  %2193 = vmatprep.subr.mxu1 %v510_v25  ;;  %v1713_v25 = vadd.f32 %v1712_v62, %v1711_v60 }
  0xf1   :  { %2156 = vmatpush3.msra.mxu0 %v462_v26  ;;  %2194 = vmatpush3.msra.mxu1 %v494_v27  ;;  %v523_v26 = vld [vmem:[%s3809_s2] sm:$0xff] }
  0xf2   :  { %2157 = vmatprep.subr.mxu0 %v477_v28  ;;  %2195 = vmatprep.subr.mxu1 %v509_v29  ;;  %v599_v29 = vadd.f32 %v1713_v25, %v523_v26 }
  0xf3   :  { %2158 = vmatpush3.msra.mxu0 %v461_v30  ;;  %2196 = vmatpush3.msra.mxu1 %v493_v31  ;;  %v1751_v30 = vadd.f32 %v1750_v63, %v1749_v61 }
  0xf4   :  { %2159 = vmatprep.subr.mxu0 %v476_v32  ;;  %2197 = vmatprep.subr.mxu1 %v508_v33  ;;  %v524_v32 = vld [vmem:[%s3809_s2 + $0x8] sm:$0xff]  ;;  %s2247_s2 = smov [#allocation2]  }
  0xf5   :  { %2160 = vmatpush3.msra.mxu0 %v460_v34  ;;  %2198 = vmatpush3.msra.mxu1 %v492_v35  ;;  %s1666_s4 = sshll.u32 %s2247_s2, 4  ;;  %s1667_s4 = int_to_ptr.vmem [resolvable:$true] %s1666_s4 }
  0xf6   :  { %2161 = vmatprep.subr.mxu0 %v475_v36  ;;  %2199 = vmatprep.subr.mxu1 %v507_v37  ;;  %v674_v37 = vadd.f32 %v1751_v30, %v599_v29  ;;  %s2225_s5 = scalar_lea.vmem %s1667_s4, 256  ;;  %p2230_p1 = scmp.lt.s32.totalorder %s1667_s4, %s1667_s4 }
  0xf7   :  { %2162 = vmatpush3.msra.mxu0 %v459_v38  ;;  %2200 = vmatpush3.msra.mxu1 %v491_v39  ;;  %p2226_p0 = scmp.ne.s32.totalorder %s1667_s4, %s2225_s5  ;;  %p2231_p2 = scmp.lt.s32.totalorder %s2225_s5, %s2225_s5 }
  0xf8   :  { %2163 = vmatprep.subr.mxu0 %v474_v40  ;;  %2201 = vmatprep.subr.mxu1 %v506_v41 }
  0xf9   :  { %2164 = vmatpush3.msra.mxu0 %v458_v42  ;;  %2202 = vmatpush3.msra.mxu1 %v490_v43  ;;  %p2232_p3 = por %p2231_p2, %p2230_p1 }
  0xfa   :  { %2165 = vmatprep.subr.mxu0 %v473_v44  ;;  %2203 = vmatprep.subr.mxu1 %v505_v45 }
  0xfb   :  { %2166 = vmatpush3.msra.mxu0 %v457_v46  ;;  %1496 = vmatprep.mubr.f32.mxu0 %v40_v47  ;;  %p2233_p4 = pnand %p2232_p3, %p2226_p0 }
  0xfc   :  { %2204 = vmatpush3.msra.mxu1 %v489_v48  ;;  %1571 = vmatprep.mubr.f32.mxu1 %v42_v49 }
  0xfd   :  { %1497 = vmatmul.mubr.f32.vlgmr.msra.gmra.mxu0 %v39_v50  ;;  %1572 = vmatmul.mubr.f32.vlgmr.msra.gmra.mxu1 %v41_v51 }
  0xfe   :  { %2215 = vmatprep.subr.mxu0 %v522_v52  ;;  %1501 = vmatprep.mubr.f32.mxu0 %v69_v53 }
  0xff   :  { %2216 = vmatpush3.msra.mxu0 %v522_v52  ;;  %1576 = vmatprep.mubr.f32.mxu1 %v71_v54 }
 0x100   :  { %2217 = vmatprep.subr.mxu0 %v521_v55 }
 0x101   :  { %1502 = vmatmul.mubr.f32.gmra.mxu0 %v68_v56  ;;  %1577 = vmatmul.mubr.f32.gmra.mxu1 %v70_v57  ;;  %v1714_v0 = vpop.f32.mrf.mxu0 }
 0x102   :  { %2218 = vmatpush3.msra.mxu0 %v521_v55  ;;  %2219 = vmatprep.mubr.msk.f32.mxu0 %vm525_vm0, %v43_v58 }
 0x103   :  { %v1715_v2 = vpop.f32.mrf.mxu0 }
 0x104   :  { %v1752_v1 = vpop.f32.mrf.mxu1  ;;  %v1716_v31 = vadd.f32 %v1715_v2, %v1714_v0 }
 0x105   :  { %2220 = vmatmul.mubr.msk.f32.vlgmr.msra.gmra.mxu0 %vm525_vm0, %v72_v59 }
 0x106   :  { %v1753_v3 = vpop.f32.mrf.mxu1  ;;  %v604_v38 = vadd.f32 %v1716_v31, %v524_v32 }
 0x107   :  { %v1754_v39 = vadd.f32 %v1753_v3, %v1752_v1 }
 0x108   :  { %v1787_v4 = vpop.f32.mrf.mxu0 }
 0x109   :  { %v679_v45 = vadd.f32 %v1754_v39, %v604_v38 }
 0x10a   :  { %v1825_v5 = vpop.f32.mrf.mxu1  ;;  %v1788_v6 = vpop.f32.mrf.mxu0 }
 0x10b   :  { %v1789_v35 = vadd.f32 %v1788_v6, %v1787_v4 }
 0x10c   :  { %v1826_v7 = vpop.f32.mrf.mxu1 }
 0x10d   :  { %v749_v41 = vadd.f32 %v1789_v35, %v674_v37  ;;  %v1827_v42 = vadd.f32 %v1826_v7, %v1825_v5 }
 0x10e   :  { %v1790_v8 = vpop.f32.mrf.mxu0 }
 0x10f   :  { %v824_v48 = vadd.f32 %v1827_v42, %v749_v41 }
 0x110   :  { %v1791_v10 = vpop.f32.mrf.mxu0 }
 0x111   :  { %v1828_v9 = vpop.f32.mrf.mxu1  ;;  %v1792_v43 = vadd.f32 %v1791_v10, %v1790_v8 }
 0x113   :  { %v1829_v11 = vpop.f32.mrf.mxu1  ;;  %v754_v49 = vadd.f32 %v1792_v43, %v679_v45 }
 0x114   :  { %v1830_v50 = vadd.f32 %v1829_v11, %v1828_v9 }
 0x116   :  { %v829_v56 = vadd.f32 %v1830_v50, %v754_v49 }
 0x12c   :  { %v1863_v12 = vpop.f32.mrf.mxu0 }
 0x12e   :  { %v1901_v13 = vpop.f32.mrf.mxu1  ;;  %v1864_v14 = vpop.f32.mrf.mxu0 }
 0x12f   :  { %v1865_v46 = vadd.f32 %v1864_v14, %v1863_v12 }
 0x130   :  { %v1902_v15 = vpop.f32.mrf.mxu1 }
 0x131   :  { %v899_v52 = vadd.f32 %v1865_v46, %v824_v48  ;;  %v1903_v53 = vadd.f32 %v1902_v15, %v1901_v13 }
 0x132   :  { %v1866_v16 = vpop.f32.mrf.mxu0 }
 0x133   :  { %v974_v60 = vadd.f32 %v1903_v53, %v899_v52 }
 0x134   :  { %v1867_v18 = vpop.f32.mrf.mxu0 }
 0x135   :  { %v1904_v17 = vpop.f32.mrf.mxu1  ;;  %v1868_v54 = vadd.f32 %v1867_v18, %v1866_v16 }
 0x137   :  { %v1905_v19 = vpop.f32.mrf.mxu1  ;;  %v904_v61 = vadd.f32 %v1868_v54, %v829_v56 }
 0x138   :  { %v1906_v62 = vadd.f32 %v1905_v19, %v1904_v17 }
 0x13a   :  { %v979_v4 = vadd.f32 %v1906_v62, %v904_v61 }
 0x150   :  { %v1939_v20 = vpop.f32.mrf.mxu0 }
 0x152   :  { %v1977_v21 = vpop.f32.mrf.mxu1  ;;  %v1940_v22 = vpop.f32.mrf.mxu0 }
 0x153   :  { %v1941_v57 = vadd.f32 %v1940_v22, %v1939_v20 }
 0x154   :  { %v1978_v23 = vpop.f32.mrf.mxu1 }
 0x155   :  { %v1049_v0 = vadd.f32 %v1941_v57, %v974_v60  ;;  %v1979_v1 = vadd.f32 %v1978_v23, %v1977_v21 }
 0x156   :  { %v1942_v24 = vpop.f32.mrf.mxu0 }
 0x157   :  { %v1124_v7 = vadd.f32 %v1979_v1, %v1049_v0 }
 0x158   :  { %v1943_v28 = vpop.f32.mrf.mxu0 }
 0x159   :  { %v1980_v27 = vpop.f32.mrf.mxu1  ;;  %v1944_v2 = vadd.f32 %v1943_v28, %v1942_v24 }
 0x15b   :  { %v1981_v33 = vpop.f32.mrf.mxu1  ;;  %v1054_v8 = vadd.f32 %v1944_v2, %v979_v4 }
 0x15c   :  { %v1982_v9 = vadd.f32 %v1981_v33, %v1980_v27 }
 0x15e   :  { %v1129_v15 = vadd.f32 %v1982_v9, %v1054_v8 }
 0x174   :  { %v2015_v34 = vpop.f32.mrf.mxu0 }
 0x176   :  { %v2053_v36 = vpop.f32.mrf.mxu1  ;;  %v2016_v40 = vpop.f32.mrf.mxu0 }
 0x177   :  { %v2017_v5 = vadd.f32 %v2016_v40, %v2015_v34 }
 0x178   :  { %v2054_v44 = vpop.f32.mrf.mxu1 }
 0x179   :  { %v1199_v11 = vadd.f32 %v2017_v5, %v1124_v7  ;;  %v2055_v12 = vadd.f32 %v2054_v44, %v2053_v36 }
 0x17a   :  { %v2018_v47 = vpop.f32.mrf.mxu0 }
 0x17b   :  { %v1274_v17 = vadd.f32 %v2055_v12, %v1199_v11 }
 0x17c   :  { %v2019_v55 = vpop.f32.mrf.mxu0 }
 0x17d   :  { %v2020_v13 = vadd.f32 %v2019_v55, %v2018_v47 }
 0x17e   :  { %v2056_v51 = vpop.f32.mrf.mxu1 }
 0x17f   :  { %v1204_v19 = vadd.f32 %v2020_v13, %v1129_v15 }
 0x180   :  { %v2057_v58 = vpop.f32.mrf.mxu1 }
 0x181   :  { %v2058_v20 = vadd.f32 %v2057_v58, %v2056_v51 }
 0x183   :  { %v1279_v28 = vadd.f32 %v2058_v20, %v1204_v19 }
 0x198   :  { %v2091_v59 = vpop.f32.mrf.mxu0 }
 0x19a   :  { %v2129_v63 = vpop.f32.mrf.mxu1  ;;  %v2092_v3 = vpop.f32.mrf.mxu0 }
 0x19b   :  { %v2093_v16 = vadd.f32 %v2092_v3, %v2091_v59 }
 0x19c   :  { %v2130_v6 = vpop.f32.mrf.mxu1 }
 0x19d   :  { %v1349_v22 = vadd.f32 %v2093_v16, %v1274_v17  ;;  %v2131_v23 = vadd.f32 %v2130_v6, %v2129_v63 }
 0x19e   :  { %v2094_v10 = vpop.f32.mrf.mxu0 }
 0x19f   :  { %v1424_v30 = vadd.f32 %v2131_v23, %v1349_v22 }
 0x1a0   :  { %v2095_v18 = vpop.f32.mrf.mxu0 }
 0x1a1   :  { %v2096_v24 = vadd.f32 %v2095_v18, %v2094_v10 }
 0x1a2   :  { %v2132_v14 = vpop.f32.mrf.mxu1 }
 0x1a3   :  { %v1354_v31 = vadd.f32 %v2096_v24, %v1279_v28 }
 0x1a4   :  { %v2133_v21 = vpop.f32.mrf.mxu1 }
 0x1a5   :  { %v2134_v32 = vadd.f32 %v2133_v21, %v2132_v14 }
 0x1a7   :  { %v1429_v39 = vadd.f32 %v2134_v32, %v1354_v31 }
 0x1bd   :  { %v2167_v25 = vpop.f32.mrf.mxu0  ;;  %v2205_v26 = vpop.f32.mrf.mxu1 }
 0x1bf   :  { %v2168_v29 = vpop.f32.mrf.mxu0  ;;  %v2206_v27 = vpop.f32.mrf.mxu1 }
 0x1c0   :  { %v2169_v33 = vadd.f32 %v2168_v29, %v2167_v25  ;;  %v2207_v40 = vadd.f32 %v2206_v27, %v2205_v26 }
 0x1c1   :  { %v2170_v34 = vpop.f32.mrf.mxu0  ;;  %v2208_v35 = vpop.f32.mrf.mxu1 }
 0x1c2   :  { %v1499_v36 = vadd.f32 %v2169_v33, %v1424_v30 }
 0x1c3   :  { %v2171_v37 = vpop.f32.mrf.mxu0  ;;  %v2209_v38 = vpop.f32.mrf.mxu1 }
 0x1c4   :  { %v2172_v41 = vadd.f32 %v2171_v37, %v2170_v34  ;;  %v2210_v44 = vadd.f32 %v2209_v38, %v2208_v35  ;;  %v1574_v45 = vadd.f32 %v2207_v40, %v1499_v36 }
 0x1c5   :  { %v2221_v42 = vpop.f32.mrf.mxu0 }
 0x1c6   :  { %v1504_v43 = vadd.f32 %v2172_v41, %v1429_v39 }
 0x1c7   :  { %v1648_v46 = vpop.f32.mrf.mxu0 }
 0x1c8   :  { %v1579_v47 = vadd.f32 %v2210_v44, %v1504_v43  ;;  %v1649_v48 = vadd.f32 %v1648_v46, %v1574_v45 }
 0x1ca   :  { %v1654_v49 = vadd.f32 %v2221_v42, %v1579_v47  ;;  %v1657_v50 = vmax.f32 %v1649_v48, 0.0 }
 0x1cc   :  { %v1658_v51 = vmax.f32 %v1654_v49, 0.0  ;;  %1659 = vst.msk [vmem:[#allocation2] sm:$0xff] %vm525_vm0, %v1657_v50 }
 0x1ce   :  { %1660 = vst.msk [vmem:[#allocation2 + $0x8] sm:$0xff] %vm525_vm0, %v1658_v51 }
 0x1cf   :  { %2236 = shalt.err (!%p2233_p4)
}
 0x1d0   :  { %s2248_s6 = smov 128   ;;  %s2249_s7 = smov 8  }
 0x1d1   :  { %1672 = dma.vmem_to_hbm [thread:$0]  %s1667_s4, 256, %s3810_s3, [#allocation3], %s2248_s6, %s2248_s6, %s2249_s7  }
 0x1d2   :  { %2245 = dma.done.wait [#allocation3], 256  }
 0x1d3   :  { %2246 = vsyncadd [#allocation3], 4294967040 }
 0x1d4   :  { %1676 = vsyncpa [#allocation3], 1 }

</bundles_post_ra>
